<compile_context>
chip_gen: v5e
topology: v5e:2x2
jax: 0.10.0
libtpu: 0.0.40
codegen_flags: <defaults>
</compile_context>

<pallas_src>
import functools

import jax
import jax.numpy as jnp
from jax import lax
from jax.experimental import pallas as pl
from jax.experimental.pallas import tpu as pltpu

LN_EPS = 1e-5          # PyTorch nn.LayerNorm default
LANE = 128
CHUNK_ROWS = 128       # in-kernel row sub-chunk (bounds live activation vregs)
TILE_B_MAX = 1024      # max rows per grid step


def _round_up(x, m):
    return ((x + m - 1) // m) * m


def _cdiv(a, b):
    return (a + b - 1) // b


def _ln_relu_bf16(h, gamma, beta, n_true):
    """LayerNorm (stats in f32 over the true feature count) + relu in bf16.

    `h` is the f32 matmul result whose lane-padded columns are exactly zero;
    gamma/beta are bf16 with zeros in the padded lanes, so padded lanes stay 0.
    """
    inv_n = 1.0 / n_true
    s1 = jnp.sum(h, axis=-1, keepdims=True)
    s2 = jnp.sum(h * h, axis=-1, keepdims=True)
    mu = s1 * inv_n
    var = jnp.maximum(s2 * inv_n - mu * mu, 0.0)      # clamp cancellation error
    inv_std = lax.rsqrt(var + LN_EPS)
    hb = h.astype(jnp.bfloat16)
    hn = (hb - mu.astype(jnp.bfloat16)) * inv_std.astype(jnp.bfloat16)
    hn = hn * gamma + beta
    return jnp.maximum(hn, 0.0)                        # relu, stays bf16


def _actor_math(x, w1, b1, g1, be1, w2, b2, g2, be2, w3, b3,
                f1_true, f2_true, out_dtype):
    """Shared forward math (used by both the kernel and the JAX reference)."""
    h = jnp.dot(x.astype(jnp.bfloat16), w1,
                preferred_element_type=jnp.float32) + b1
    h = _ln_relu_bf16(h, g1, be1, f1_true)             # bf16 activations
    h = jnp.dot(h, w2, preferred_element_type=jnp.float32) + b2
    h = _ln_relu_bf16(h, g2, be2, f2_true)
    h = jnp.dot(h, w3, preferred_element_type=jnp.float32) + b3
    return jnp.tanh(h).astype(out_dtype)


def actor_kernel(x_ref,
                 w1_ref, b1_ref, g1_ref, be1_ref,
                 w2_ref, b2_ref, g2_ref, be2_ref,
                 w3_ref, b3_ref,
                 out_ref,
                 *, tile_rows, chunk, f1_true, f2_true):
    def run_rows(r0, rows):
        x = x_ref[pl.ds(r0, rows), :]
        out_ref[pl.ds(r0, rows), :] = _actor_math(
            x,
            w1_ref[...], b1_ref[...], g1_ref[...], be1_ref[...],
            w2_ref[...], b2_ref[...], g2_ref[...], be2_ref[...],
            w3_ref[...], b3_ref[...],
            f1_true, f2_true, out_ref.dtype)

    n_full = tile_rows // chunk
    rem = tile_rows % chunk

    if n_full > 0:
        def body(c, carry):
            r0 = pl.multiple_of(c * chunk, chunk)
            run_rows(r0, chunk)
            return carry
        lax.fori_loop(0, n_full, body, 0, unroll=True)

    if rem > 0:
        run_rows(n_full * chunk, rem)   # static tail chunk (multiple of 8)


@functools.partial(
    jax.jit,
    static_argnames=("action_dim", "f1_true", "f2_true", "tile_b_max", "out_dtype"))
def actor_forward(state, params, *, action_dim, f1_true=400, f2_true=300,
                  tile_b_max=TILE_B_MAX, out_dtype=jnp.float32):
    w1, b1, g1, be1, w2, b2, g2, be2, w3, b3 = params
    batch, state_dim = state.shape
    out_pad = w3.shape[1]

    # Batch tiling: avoid large padding; keep >=2 grid steps at large batch so
    # v7x's two TensorCores both get work (harmless on v5e/v6e).
    n_steps = max(_cdiv(batch, tile_b_max), 1)
    if n_steps == 1 and batch >= 256:
        n_steps = 2
    tb = _round_up(max(_cdiv(batch, n_steps), 8), 8)
    padded_b = tb * n_steps
    if padded_b != batch:
        state = jnp.pad(state, ((0, padded_b - batch), (0, 0)))

    kernel = functools.partial(actor_kernel,
                               tile_rows=tb, chunk=min(CHUNK_ROWS, tb),
                               f1_true=f1_true, f2_true=f2_true)

    def resident(a):
        # Constant block index -> parameter stays VMEM-resident across the grid.
        return pl.BlockSpec(a.shape, lambda i: (0, 0))

    out = pl.pallas_call(
        kernel,
        out_shape=jax.ShapeDtypeStruct((padded_b, out_pad), out_dtype),
        grid=(n_steps,),
        in_specs=[
            pl.BlockSpec((tb, state_dim), lambda i: (i, 0)),   # state tile
            resident(w1), resident(b1), resident(g1), resident(be1),
            resident(w2), resident(b2), resident(g2), resident(be2),
            resident(w3), resident(b3),
        ],
        out_specs=pl.BlockSpec((tb, out_pad), lambda i: (i, 0)),
        compiler_params=pltpu.CompilerParams(
            dimension_semantics=("parallel",),
        ),
    )(state, w1, b1, g1, be1, w2, b2, g2, be2, w3, b3)

    # Drop batch padding and lane padding (all indices static under jit).
    return out[:batch, :action_dim]


def init_actor_params(key, state_dim, action_dim, fc1_dim=400, fc2_dim=300):
    """PyTorch-default-initialized params, lane-padded for clean TPU layout."""
    ks = jax.random.split(key, 6)
    f1p = _round_up(fc1_dim, LANE)        # 400 -> 512
    f2p = _round_up(fc2_dim, LANE)        # 300 -> 384
    outp = _round_up(action_dim, LANE)    # action_dim -> 128

    def lin(kw, kb, fan_in, fan_out):
        # PyTorch Linear default init: U(-1/sqrt(fan_in), 1/sqrt(fan_in))
        bound = 1.0 / jnp.sqrt(fan_in)
        w = jax.random.uniform(kw, (fan_in, fan_out), jnp.float32, -bound, bound)
        b = jax.random.uniform(kb, (1, fan_out), jnp.float32, -bound, bound)
        return w, b

    w1, b1 = lin(ks[0], ks[1], state_dim, fc1_dim)
    w2, b2 = lin(ks[2], ks[3], fc1_dim, fc2_dim)
    w3, b3 = lin(ks[4], ks[5], fc2_dim, action_dim)

    # Lane-pad with exact zeros (weights, biases) so padded lanes stay zero.
    w1p = jnp.zeros((state_dim, f1p), jnp.float32).at[:, :fc1_dim].set(w1)
    b1p = jnp.zeros((1, f1p), jnp.float32).at[:, :fc1_dim].set(b1)
    w2p = jnp.zeros((f1p, f2p), jnp.float32).at[:fc1_dim, :fc2_dim].set(w2)
    b2p = jnp.zeros((1, f2p), jnp.float32).at[:, :fc2_dim].set(b2)
    w3p = jnp.zeros((f2p, outp), jnp.float32).at[:fc2_dim, :action_dim].set(w3)
    b3p = jnp.zeros((1, outp), jnp.float32).at[:, :action_dim].set(b3)

    # LayerNorm: weight=1 / bias=0 on true lanes, exactly 0 on padded lanes
    # (so normalized padded lanes are zeroed out). Stored bf16 for bf16 VALU.
    g1 = jnp.zeros((1, f1p), jnp.float32).at[:, :fc1_dim].set(1.0)
    be1 = jnp.zeros((1, f1p), jnp.float32)
    g2 = jnp.zeros((1, f2p), jnp.float32).at[:, :fc2_dim].set(1.0)
    be2 = jnp.zeros((1, f2p), jnp.float32)

    return (w1p.astype(jnp.bfloat16), b1p, g1.astype(jnp.bfloat16), be1.astype(jnp.bfloat16),
            w2p.astype(jnp.bfloat16), b2p, g2.astype(jnp.bfloat16), be2.astype(jnp.bfloat16),
            w3p.astype(jnp.bfloat16), b3p)


def actor_reference(state, params, *, action_dim, f1_true=400, f2_true=300,
                    out_dtype=jnp.float32):
    """Pure-JAX reference mirroring the kernel's exact precision path."""
    w1, b1, g1, be1, w2, b2, g2, be2, w3, b3 = params
    full = _actor_math(state, w1, b1, g1, be1, w2, b2, g2, be2, w3, b3,
                       f1_true, f2_true, out_dtype)
    return full[:, :action_dim]


if __name__ == "__main__":
    key = jax.random.PRNGKey(0)
    k_params, k_s1, k_s2 = jax.random.split(key, 3)

    state_dim = 16
    action_dim = 4
    params = init_actor_params(k_params, state_dim, action_dim)

    # Small case: single grid step, single in-kernel chunk.
    s_small = jax.random.normal(k_s1, (4, state_dim), jnp.float32)
    out_small = jax.block_until_ready(
        actor_forward(s_small, params, action_dim=action_dim))
    ref_small = actor_reference(s_small, params, action_dim=action_dim)
    assert out_small.shape == (4, action_dim)
    assert jnp.allclose(out_small, ref_small, atol=1e-2, rtol=1e-2), \
        "small-batch mismatch vs reference"

    # Larger case: 2 grid steps, padded batch, fori_loop chunk + remainder chunk.
    s_big = jax.random.normal(k_s2, (260, state_dim), jnp.float32)
    out_big = jax.block_until_ready(
        actor_forward(s_big, params, action_dim=action_dim))
    ref_big = actor_reference(s_big, params, action_dim=action_dim)
    assert out_big.shape == (260, action_dim)
    assert jnp.allclose(out_big, ref_big, atol=1e-2, rtol=1e-2), \
        "large-batch mismatch vs reference"

    # TODO(synk): torch.optim.Adam (training step) is not part of the forward
    # pass and is intentionally not implemented in the kernel.
    print("KERNEL_OK")
</pallas_src>

<mosaic_0001>
module attributes {stable_mosaic.version = 11 : i64} {
  func.func @actor_kernel(%arg0: i32, %arg1: memref<8x16xf32, #tpu.memory_space<vmem>>, %arg2: memref<16x512xbf16, #tpu.memory_space<vmem>>, %arg3: memref<1x512xf32, #tpu.memory_space<vmem>>, %arg4: memref<1x512xbf16, #tpu.memory_space<vmem>>, %arg5: memref<1x512xbf16, #tpu.memory_space<vmem>>, %arg6: memref<512x384xbf16, #tpu.memory_space<vmem>>, %arg7: memref<1x384xf32, #tpu.memory_space<vmem>>, %arg8: memref<1x384xbf16, #tpu.memory_space<vmem>>, %arg9: memref<1x384xbf16, #tpu.memory_space<vmem>>, %arg10: memref<384x128xbf16, #tpu.memory_space<vmem>>, %arg11: memref<1x128xf32, #tpu.memory_space<vmem>>, %arg12: memref<8x128xf32, #tpu.memory_space<vmem>>) attributes {dimension_semantics = [#tpu.dimension_semantics<parallel>], iteration_bounds = array<i64: 1>, scalar_prefetch = 0 : i64, scratch_operands = 0 : i64, tpu.core_type = #tpu.core_type<tc>, window_params = [{transform_indices = @transform_0, window_bounds = array<i64: 8, 16>}, {pipeline_mode = #tpu.pipeline_mode<synchronous>, transform_indices = @transform_1, window_bounds = array<i64: 16, 512>}, {pipeline_mode = #tpu.pipeline_mode<synchronous>, transform_indices = @transform_2, window_bounds = array<i64: 1, 512>}, {pipeline_mode = #tpu.pipeline_mode<synchronous>, transform_indices = @transform_3, window_bounds = array<i64: 1, 512>}, {pipeline_mode = #tpu.pipeline_mode<synchronous>, transform_indices = @transform_4, window_bounds = array<i64: 1, 512>}, {pipeline_mode = #tpu.pipeline_mode<synchronous>, transform_indices = @transform_5, window_bounds = array<i64: 512, 384>}, {pipeline_mode = #tpu.pipeline_mode<synchronous>, transform_indices = @transform_6, window_bounds = array<i64: 1, 384>}, {pipeline_mode = #tpu.pipeline_mode<synchronous>, transform_indices = @transform_7, window_bounds = array<i64: 1, 384>}, {pipeline_mode = #tpu.pipeline_mode<synchronous>, transform_indices = @transform_8, window_bounds = array<i64: 1, 384>}, {pipeline_mode = #tpu.pipeline_mode<synchronous>, transform_indices = @transform_9, window_bounds = array<i64: 384, 128>}, {pipeline_mode = #tpu.pipeline_mode<synchronous>, transform_indices = @transform_10, window_bounds = array<i64: 1, 128>}, {transform_indices = @transform_11, window_bounds = array<i64: 8, 128>}]} {
    %c0_i32 = arith.constant 0 : i32
    %c8_i32 = arith.constant 8 : i32
    %0 = arith.muli %c0_i32, %c8_i32 : i32
    %1 = tpu.assume_multiple %0, 8 : i32
    %2 = arith.index_cast %1 : i32 to index
    %c0 = arith.constant 0 : index
    %3 = vector.load %arg1[%2, %c0] : memref<8x16xf32, #tpu.memory_space<vmem>>, vector<8x16xf32>
    %c0_0 = arith.constant 0 : index
    %c0_1 = arith.constant 0 : index
    %4 = vector.load %arg2[%c0_0, %c0_1] : memref<16x512xbf16, #tpu.memory_space<vmem>>, vector<16x512xbf16>
    %c0_2 = arith.constant 0 : index
    %c0_3 = arith.constant 0 : index
    %5 = vector.load %arg3[%c0_2, %c0_3] : memref<1x512xf32, #tpu.memory_space<vmem>>, vector<1x512xf32>
    %c0_4 = arith.constant 0 : index
    %c0_5 = arith.constant 0 : index
    %6 = vector.load %arg4[%c0_4, %c0_5] : memref<1x512xbf16, #tpu.memory_space<vmem>>, vector<1x512xbf16>
    %c0_6 = arith.constant 0 : index
    %c0_7 = arith.constant 0 : index
    %7 = vector.load %arg5[%c0_6, %c0_7] : memref<1x512xbf16, #tpu.memory_space<vmem>>, vector<1x512xbf16>
    %c0_8 = arith.constant 0 : index
    %c0_9 = arith.constant 0 : index
    %8 = vector.load %arg6[%c0_8, %c0_9] : memref<512x384xbf16, #tpu.memory_space<vmem>>, vector<512x384xbf16>
    %c0_10 = arith.constant 0 : index
    %c0_11 = arith.constant 0 : index
    %9 = vector.load %arg7[%c0_10, %c0_11] : memref<1x384xf32, #tpu.memory_space<vmem>>, vector<1x384xf32>
    %c0_12 = arith.constant 0 : index
    %c0_13 = arith.constant 0 : index
    %10 = vector.load %arg8[%c0_12, %c0_13] : memref<1x384xbf16, #tpu.memory_space<vmem>>, vector<1x384xbf16>
    %c0_14 = arith.constant 0 : index
    %c0_15 = arith.constant 0 : index
    %11 = vector.load %arg9[%c0_14, %c0_15] : memref<1x384xbf16, #tpu.memory_space<vmem>>, vector<1x384xbf16>
    %c0_16 = arith.constant 0 : index
    %c0_17 = arith.constant 0 : index
    %12 = vector.load %arg10[%c0_16, %c0_17] : memref<384x128xbf16, #tpu.memory_space<vmem>>, vector<384x128xbf16>
    %c0_18 = arith.constant 0 : index
    %c0_19 = arith.constant 0 : index
    %13 = vector.load %arg11[%c0_18, %c0_19] : memref<1x128xf32, #tpu.memory_space<vmem>>, vector<1x128xf32>
    %14 = arith.truncf %3 : vector<8x16xf32> to vector<8x16xbf16>
    %cst = arith.constant dense<0.000000e+00> : vector<8x512xf32>
    %15 = tpu.matmul %14, %4, %cst {dimension_numbers = #tpu.dot_dimension_numbers<[1], [0], [0], [1], [0, 0, 1, 1], [], []>} : vector<8x16xbf16>, vector<16x512xbf16>, vector<8x512xf32> -> vector<8x512xf32>
    %16 = vector.broadcast %5 : vector<1x512xf32> to vector<8x512xf32>
    %17 = arith.addf %15, %16 : vector<8x512xf32>
    %cst_20 = arith.constant dense<0.000000e+00> : vector<8xf32>
    %18 = vector.multi_reduction <add>, %17, %cst_20 [1] : vector<8x512xf32> to vector<8xf32>
    %19 = vector.shape_cast %18 : vector<8xf32> to vector<8x1xf32>
    %20 = arith.mulf %17, %17 : vector<8x512xf32>
    %cst_21 = arith.constant dense<0.000000e+00> : vector<8xf32>
    %21 = vector.multi_reduction <add>, %20, %cst_21 [1] : vector<8x512xf32> to vector<8xf32>
    %22 = vector.shape_cast %21 : vector<8xf32> to vector<8x1xf32>
    %cst_22 = arith.constant 2.500000e-03 : f32
    %23 = vector.broadcast %cst_22 : f32 to vector<8x1xf32>
    %24 = arith.mulf %19, %23 : vector<8x1xf32>
    %cst_23 = arith.constant 2.500000e-03 : f32
    %25 = vector.broadcast %cst_23 : f32 to vector<8x1xf32>
    %26 = arith.mulf %22, %25 : vector<8x1xf32>
    %27 = arith.mulf %24, %24 : vector<8x1xf32>
    %28 = arith.subf %26, %27 : vector<8x1xf32>
    %cst_24 = arith.constant 0.000000e+00 : f32
    %29 = vector.broadcast %cst_24 : f32 to vector<8x1xf32>
    %30 = arith.maximumf %28, %29 : vector<8x1xf32>
    %cst_25 = arith.constant 9.99999974E-6 : f32
    %31 = vector.broadcast %cst_25 : f32 to vector<8x1xf32>
    %32 = arith.addf %30, %31 : vector<8x1xf32>
    %33 = math.rsqrt %32 : vector<8x1xf32>
    %34 = arith.truncf %17 : vector<8x512xf32> to vector<8x512xbf16>
    %35 = arith.truncf %24 : vector<8x1xf32> to vector<8x1xbf16>
    %36 = vector.broadcast %35 : vector<8x1xbf16> to vector<8x512xbf16>
    %37 = arith.subf %34, %36 : vector<8x512xbf16>
    %38 = arith.truncf %33 : vector<8x1xf32> to vector<8x1xbf16>
    %39 = vector.broadcast %38 : vector<8x1xbf16> to vector<8x512xbf16>
    %40 = arith.mulf %37, %39 : vector<8x512xbf16>
    %41 = vector.broadcast %6 : vector<1x512xbf16> to vector<8x512xbf16>
    %42 = arith.mulf %40, %41 : vector<8x512xbf16>
    %43 = vector.broadcast %7 : vector<1x512xbf16> to vector<8x512xbf16>
    %44 = arith.addf %42, %43 : vector<8x512xbf16>
    %cst_26 = arith.constant 0.000000e+00 : bf16
    %45 = vector.broadcast %cst_26 : bf16 to vector<8x512xbf16>
    %46 = arith.maximumf %44, %45 : vector<8x512xbf16>
    %cst_27 = arith.constant dense<0.000000e+00> : vector<8x384xf32>
    %47 = tpu.matmul %46, %8, %cst_27 {dimension_numbers = #tpu.dot_dimension_numbers<[1], [0], [0], [1], [0, 0, 1, 1], [], []>} : vector<8x512xbf16>, vector<512x384xbf16>, vector<8x384xf32> -> vector<8x384xf32>
    %48 = vector.broadcast %9 : vector<1x384xf32> to vector<8x384xf32>
    %49 = arith.addf %47, %48 : vector<8x384xf32>
    %cst_28 = arith.constant dense<0.000000e+00> : vector<8xf32>
    %50 = vector.multi_reduction <add>, %49, %cst_28 [1] : vector<8x384xf32> to vector<8xf32>
    %51 = vector.shape_cast %50 : vector<8xf32> to vector<8x1xf32>
    %52 = arith.mulf %49, %49 : vector<8x384xf32>
    %cst_29 = arith.constant dense<0.000000e+00> : vector<8xf32>
    %53 = vector.multi_reduction <add>, %52, %cst_29 [1] : vector<8x384xf32> to vector<8xf32>
    %54 = vector.shape_cast %53 : vector<8xf32> to vector<8x1xf32>
    %cst_30 = arith.constant 0.00333333341 : f32
    %55 = vector.broadcast %cst_30 : f32 to vector<8x1xf32>
    %56 = arith.mulf %51, %55 : vector<8x1xf32>
    %cst_31 = arith.constant 0.00333333341 : f32
    %57 = vector.broadcast %cst_31 : f32 to vector<8x1xf32>
    %58 = arith.mulf %54, %57 : vector<8x1xf32>
    %59 = arith.mulf %56, %56 : vector<8x1xf32>
    %60 = arith.subf %58, %59 : vector<8x1xf32>
    %cst_32 = arith.constant 0.000000e+00 : f32
    %61 = vector.broadcast %cst_32 : f32 to vector<8x1xf32>
    %62 = arith.maximumf %60, %61 : vector<8x1xf32>
    %cst_33 = arith.constant 9.99999974E-6 : f32
    %63 = vector.broadcast %cst_33 : f32 to vector<8x1xf32>
    %64 = arith.addf %62, %63 : vector<8x1xf32>
    %65 = math.rsqrt %64 : vector<8x1xf32>
    %66 = arith.truncf %49 : vector<8x384xf32> to vector<8x384xbf16>
    %67 = arith.truncf %56 : vector<8x1xf32> to vector<8x1xbf16>
    %68 = vector.broadcast %67 : vector<8x1xbf16> to vector<8x384xbf16>
    %69 = arith.subf %66, %68 : vector<8x384xbf16>
    %70 = arith.truncf %65 : vector<8x1xf32> to vector<8x1xbf16>
    %71 = vector.broadcast %70 : vector<8x1xbf16> to vector<8x384xbf16>
    %72 = arith.mulf %69, %71 : vector<8x384xbf16>
    %73 = vector.broadcast %10 : vector<1x384xbf16> to vector<8x384xbf16>
    %74 = arith.mulf %72, %73 : vector<8x384xbf16>
    %75 = vector.broadcast %11 : vector<1x384xbf16> to vector<8x384xbf16>
    %76 = arith.addf %74, %75 : vector<8x384xbf16>
    %cst_34 = arith.constant 0.000000e+00 : bf16
    %77 = vector.broadcast %cst_34 : bf16 to vector<8x384xbf16>
    %78 = arith.maximumf %76, %77 : vector<8x384xbf16>
    %cst_35 = arith.constant dense<0.000000e+00> : vector<8x128xf32>
    %79 = tpu.matmul %78, %12, %cst_35 {dimension_numbers = #tpu.dot_dimension_numbers<[1], [0], [0], [1], [0, 0, 1, 1], [], []>} : vector<8x384xbf16>, vector<384x128xbf16>, vector<8x128xf32> -> vector<8x128xf32>
    %80 = vector.broadcast %13 : vector<1x128xf32> to vector<8x128xf32>
    %81 = arith.addf %79, %80 : vector<8x128xf32>
    %82 = math.tanh %81 : vector<8x128xf32>
    %83 = arith.index_cast %1 : i32 to index
    %c0_36 = arith.constant 0 : index
    %84 = vector.load %arg12[%83, %c0_36] : memref<8x128xf32, #tpu.memory_space<vmem>>, vector<8x128xf32>
    tpu.vector_store %arg12[%83, %c0_36], %82 {strides = array<i32>} : memref<8x128xf32, #tpu.memory_space<vmem>>, vector<8x128xf32>,
    %c1_i32 = arith.constant 1 : i32
    return
  }
  func.func @transform_0(%arg0: i32) -> (i32, i32) {
    %c0_i32 = arith.constant 0 : i32
    %c0_i32_0 = arith.constant 0 : i32
    return %arg0, %c0_i32 : i32, i32
  }
  func.func @transform_1(%arg0: i32) -> (i32, i32) {
    %c0_i32 = arith.constant 0 : i32
    %c0_i32_0 = arith.constant 0 : i32
    %c0_i32_1 = arith.constant 0 : i32
    return %c0_i32, %c0_i32_0 : i32, i32
  }
  func.func @transform_2(%arg0: i32) -> (i32, i32) {
    %c0_i32 = arith.constant 0 : i32
    %c0_i32_0 = arith.constant 0 : i32
    %c0_i32_1 = arith.constant 0 : i32
    return %c0_i32, %c0_i32_0 : i32, i32
  }
  func.func @transform_3(%arg0: i32) -> (i32, i32) {
    %c0_i32 = arith.constant 0 : i32
    %c0_i32_0 = arith.constant 0 : i32
    %c0_i32_1 = arith.constant 0 : i32
    return %c0_i32, %c0_i32_0 : i32, i32
  }
  func.func @transform_4(%arg0: i32) -> (i32, i32) {
    %c0_i32 = arith.constant 0 : i32
    %c0_i32_0 = arith.constant 0 : i32
    %c0_i32_1 = arith.constant 0 : i32
    return %c0_i32, %c0_i32_0 : i32, i32
  }
  func.func @transform_5(%arg0: i32) -> (i32, i32) {
    %c0_i32 = arith.constant 0 : i32
    %c0_i32_0 = arith.constant 0 : i32
    %c0_i32_1 = arith.constant 0 : i32
    return %c0_i32, %c0_i32_0 : i32, i32
  }
  func.func @transform_6(%arg0: i32) -> (i32, i32) {
    %c0_i32 = arith.constant 0 : i32
    %c0_i32_0 = arith.constant 0 : i32
    %c0_i32_1 = arith.constant 0 : i32
    return %c0_i32, %c0_i32_0 : i32, i32
  }
  func.func @transform_7(%arg0: i32) -> (i32, i32) {
    %c0_i32 = arith.constant 0 : i32
    %c0_i32_0 = arith.constant 0 : i32
    %c0_i32_1 = arith.constant 0 : i32
    return %c0_i32, %c0_i32_0 : i32, i32
  }
  func.func @transform_8(%arg0: i32) -> (i32, i32) {
    %c0_i32 = arith.constant 0 : i32
    %c0_i32_0 = arith.constant 0 : i32
    %c0_i32_1 = arith.constant 0 : i32
    return %c0_i32, %c0_i32_0 : i32, i32
  }
  func.func @transform_9(%arg0: i32) -> (i32, i32) {
    %c0_i32 = arith.constant 0 : i32
    %c0_i32_0 = arith.constant 0 : i32
    %c0_i32_1 = arith.constant 0 : i32
    return %c0_i32, %c0_i32_0 : i32, i32
  }
  func.func @transform_10(%arg0: i32) -> (i32, i32) {
    %c0_i32 = arith.constant 0 : i32
    %c0_i32_0 = arith.constant 0 : i32
    %c0_i32_1 = arith.constant 0 : i32
    return %c0_i32, %c0_i32_0 : i32, i32
  }
  func.func @transform_11(%arg0: i32) -> (i32, i32) {
    %c0_i32 = arith.constant 0 : i32
    %c0_i32_0 = arith.constant 0 : i32
    return %arg0, %c0_i32 : i32, i32
  }
}

</mosaic_0001>

<bundles_post_ra>
// kernel: actor_forward.1
= control target key start
LH: loop header
LB: loop body
LE: loop exit
PB: predicated region body
PF: predicated region fallthrough
CT: control target
= control target key end

     0   :  { %16 = vsyncpa [#allocation3], 0  ;;  %s2395_s0 = inlined_call_operand.vmem [shape: f32[8,16], index: 0, kind: input, shape index: {}]   ;;  %s2396_s1 = inlined_call_operand.hbm [shape: bf16[16,512], index: 1, kind: input, shape index: {}]   ;;  %s2397_s2 = inlined_call_operand.vmem [shape: f32[1,512], index: 2, kind: input, shape index: {}]   ;;  %s2398_s3 = inlined_call_operand.vmem [shape: bf16[1,512], index: 3, kind: input, shape index: {}]   ;;  %s2399_s4 = inlined_call_operand.vmem [shape: bf16[1,512], index: 4, kind: input, shape index: {}]   ;;  %s2400_s5 = inlined_call_operand.hbm [shape: bf16[512,384], index: 5, kind: input, shape index: {}]   ;;  %s2401_s6 = inlined_call_operand.vmem [shape: f32[1,384], index: 6, kind: input, shape index: {}]   ;;  %s2402_s7 = inlined_call_operand.vmem [shape: bf16[1,384], index: 7, kind: input, shape index: {}]   ;;  %s2403_s8 = inlined_call_operand.hbm [shape: bf16[1,384], index: 8, kind: input, shape index: {}]   ;;  %s2404_s9 = inlined_call_operand.hbm [shape: bf16[384,128], index: 9, kind: input, shape index: {}]   ;;  %s2405_s10 = inlined_call_operand.vmem [shape: f32[1,128], index: 10, kind: input, shape index: {}]   ;;  %s2406_s11 = inlined_call_operand.vmem [shape: f32[8,128], index: 11, kind: output, shape index: {}]  }
   0x1   :  { %17 = vsyncpa [#allocation5], 0  ;;  %s44_s19 = sshll.u32 %s2400_s5, 4  ;;  %s45_s19 = int_to_ptr.hbm [resolvable:$true] %s44_s19 }
   0x2   :  { %18 = vsyncpa [#allocation8], 0  ;;  %s2227_s20 = smov [#allocation4]   ;;  %s25_s24 = sshll.u32 %s2396_s1, 4  ;;  %s26_s24 = int_to_ptr.hbm [resolvable:$true] %s25_s24 }
   0x3   :  { %s46_s21 = sshll.u32 %s2227_s20, 4  ;;  %s2228_s25 = smov 192   ;;  %s47_s21 = int_to_ptr.vmem [resolvable:$true] %s46_s21 }
   0x4   :  { %s2229_s26 = smov 12   ;;  %s2230_s27 = smov [#allocation2]  }
   0x5   :  { %52 = dma.hbm_to_vmem [thread:$0]  %s45_s19, 12288, %s47_s21, [#allocation5], %s2228_s25, %s2228_s25, %s2229_s26  }
   0x6   :  { %s27_s28 = sshll.u32 %s2230_s27, 4  ;;  %s2231_s29 = smov 256   ;;  %s28_s28 = int_to_ptr.vmem [resolvable:$true] %s27_s28 }
   0x7   :  { %s2232_s30 = smov 16   ;;  %s62_s13 = sshll.u32 %s2403_s8, 4  ;;  %s63_s13 = int_to_ptr.hbm [resolvable:$true] %s62_s13 }
   0x8   :  { %33 = dma.hbm_to_vmem [thread:$0]  %s26_s24, 512, %s28_s28, [#allocation3], %s2231_s29, %s2231_s29, %s2232_s30  }
   0x9   :  { %s2233_s14 = smov [#allocation6]   ;;  %s72_s17 = sshll.u32 %s2404_s9, 4  ;;  %s73_s17 = int_to_ptr.hbm [resolvable:$true] %s72_s17 }
   0xa   :  { %s64_s15 = sshll.u32 %s2233_s14, 4  ;;  %s2234_s18 = smov [#allocation7]   ;;  %s65_s15 = int_to_ptr.vmem [resolvable:$true] %s64_s15 }
   0xb   :  { %67 = dma.hbm_to_vmem [thread:$0]  %s63_s13, 48, %s65_s15, [#allocation5]  }
   0xc   :  { %s74_s19 = sshll.u32 %s2234_s18, 4  ;;  %s2235_s20 = smov 64   ;;  %s75_s19 = int_to_ptr.vmem [resolvable:$true] %s74_s19 }
   0xd   :  { %s2236_s21 = smov 4  }
   0xe   :  { %80 = dma.hbm_to_vmem [thread:$0]  %s73_s17, 3072, %s75_s19, [#allocation8], %s2235_s20, %s2235_s20, %s2236_s21  }
   0xf   :  { %2221 = dma.done.wait [#allocation3], 512  }
  0x10   :  { %2222 = vsyncadd [#allocation3], 4294966784 }
  0x11   :  { %2223 = dma.done.wait [#allocation5], 12336  }
  0x12   :  { %2224 = vsyncadd [#allocation5], 4294954960 }
  0x13   :  { %2225 = dma.done.wait [#allocation8], 3072  }
  0x14   :  { %2226 = vsyncadd [#allocation8], 4294964224  ;;  %v1486_v0 = vld [vmem:[#allocation2] sm:$0xf]  ;;  %v1986_v1 = vld [vmem:[#allocation2 + $0xc] sm:$0xf0] }
  0x15   :  { %v1494_v2 = vld [vmem:[#allocation2 + $0x8] sm:$0xf]  ;;  %v1487_v3 = vor.u32 %v1986_v1, %v1486_v0  ;;  %v1987_v4 = vld [vmem:[#allocation2 + $0x14] sm:$0xf0]  ;;  %v1985_v6 = vld [vmem:[#allocation2 + $0xc] sm:$0xf] }
  0x16   :  { %v100_v5 = vld [vmem:[%s2395_s0] sm:$0xff]  ;;  %v1495_v7 = vor.u32 %v1987_v4, %v1494_v2  ;;  %v1984_v10 = vld [vmem:[#allocation2 + $0x4] sm:$0xf]  ;;  %v1488_v11 = vld [vmem:[#allocation2 + $0x10] sm:$0xf0]  ;;  %vm318_vm0 = vcmask 130048  }
  0x17   :  { %v288_v8 = vpack.c.bf16 %v100_v5, %v100_v5  ;;  %v1496_v9 = vld [vmem:[#allocation2 + $0x18] sm:$0xf0]  ;;  %329 = vmatpush.bf16.msra.mxu3 %v1487_v3  ;;  %v1491_v13 = vor.u32 %v1984_v10, %v1488_v11  ;;  %v105_v14 = vld [vmem:[%s2397_s2] sm:$0xf]  ;;  %v1590_v18 = vld [vmem:[#allocation4 + $0xa8] sm:$0xf] }
  0x18   :  { %v1499_v12 = vor.u32 %v1985_v6, %v1496_v9  ;;  %355 = vmatpush.bf16.msra.mxu2 %v1495_v7  ;;  %v291_v15 = vperm.slane %v105_v14, 1  ;;  %v290_v16 = vperm.slane %v105_v14, 0  ;;  %v2010_v19 = vld [vmem:[#allocation4 + $0xb0] sm:$0xf0]  ;;  %v1686_v20 = vld [vmem:[#allocation4 + $0x168] sm:$0xf] }
  0x19   :  { %342 = vmatpush.bf16.msra.mxu1 %v1491_v13  ;;  %v1591_v21 = vor.u32 %v2010_v19, %v1590_v18  ;;  %v2034_v22 = vld [vmem:[#allocation4 + $0x170] sm:$0xf0]  ;;  %v1782_v23 = vld [vmem:[#allocation4 + $0x228] sm:$0xf]  ;;  %v292_v37 = vperm.slane %v105_v14, 2  ;;  %v293_v40 = vperm.slane %v105_v14, 3 }
  0x1a   :  { %1500 = vmatmul.msk.bf16.vlgmr.msra.gmra.mxu3 %vm318_vm0, %v288_v8  ;;  %v2058_v24 = vld [vmem:[#allocation4 + $0x230] sm:$0xf0]  ;;  %v1687_v26 = vor.u32 %v2034_v22, %v1686_v20  ;;  %v1878_v28 = vld [vmem:[#allocation4 + $0x2e8] sm:$0xf]  ;;  %v1578_v55 = vld [vmem:[#allocation4 + $0x90] sm:$0xf] }
  0x1b   :  { %368 = vmatpush.bf16.msrb.mxu3 %v1499_v12  ;;  %1502 = vmatmul.msk.bf16.vlgmr.msra.gmra.mxu2 %vm318_vm0, %v288_v8  ;;  %v1783_v27 = vor.u32 %v2058_v24, %v1782_v23  ;;  %v2082_v29 = vld [vmem:[#allocation4 + $0x2f0] sm:$0xf0]  ;;  %v2007_v56 = vld [vmem:[#allocation4 + $0x98] sm:$0xf0]  ;;  %v1674_v57 = vld [vmem:[#allocation4 + $0x150] sm:$0xf] }
  0x1c   :  { %1501 = vmatmul.msk.bf16.vlgmr.msra.gmra.mxu1 %vm318_vm0, %v288_v8  ;;  %1025 = vmatpush.bf16.msra.mxu0 %v1591_v21  ;;  %v1879_v31 = vor.u32 %v2082_v29, %v1878_v28  ;;  %v1579_v58 = vor.u32 %v2007_v56, %v1578_v55  ;;  %v2031_v59 = vld [vmem:[#allocation4 + $0x158] sm:$0xf0]  ;;  %v1770_v60 = vld [vmem:[#allocation4 + $0x210] sm:$0xf]  ;;  %v1566_v3 = vld [vmem:[#allocation4 + $0x78] sm:$0xf] }
  0x1d   :  { %1038 = vmatpush.bf16.msrb.mxu1 %v1687_v26  ;;  %1051 = vmatpush.bf16.msrb.mxu2 %v1783_v27  ;;  %v2055_v61 = vld [vmem:[#allocation4 + $0x218] sm:$0xf0]  ;;  %v1675_v62 = vor.u32 %v2031_v59, %v1674_v57  ;;  %v1866_v0 = vld [vmem:[#allocation4 + $0x2d0] sm:$0xf]  ;;  %v2004_v4 = vld [vmem:[#allocation4 + $0x80] sm:$0xf0] }
  0x1e   :  { %v1771_v63 = vor.u32 %v2055_v61, %v1770_v60  ;;  %v2079_v1 = vld [vmem:[#allocation4 + $0x2d8] sm:$0xf0]  ;;  %v1662_v5 = vld [vmem:[#allocation4 + $0x138] sm:$0xf]  ;;  %v1567_v6 = vor.u32 %v2004_v4, %v1566_v3  ;;  %v2028_v7 = vld [vmem:[#allocation4 + $0x140] sm:$0xf0] }
  0x1f   :  { %1064 = vmatpush.bf16.msra.mxu3 %v1879_v31  ;;  %v1867_v2 = vor.u32 %v2079_v1, %v1866_v0  ;;  %v2052_v9 = vld [vmem:[#allocation4 + $0x200] sm:$0xf0]  ;;  %v1663_v10 = vor.u32 %v2028_v7, %v1662_v5  ;;  %v1854_v12 = vld [vmem:[#allocation4 + $0x2b8] sm:$0xf]  ;;  %v2025_v19 = vld [vmem:[#allocation4 + $0x128] sm:$0xf0] }
  0x20   :  { %1026 = vmatpush.bf16.msra.mxu0 %v1579_v58  ;;  %v2076_v13 = vld [vmem:[#allocation4 + $0x2c0] sm:$0xf0]  ;;  %v1746_v20 = vld [vmem:[#allocation4 + $0x1e0] sm:$0xf]  ;;  %v2049_v21 = vld [vmem:[#allocation4 + $0x1e8] sm:$0xf0] }
  0x21   :  { %1039 = vmatpush.bf16.msrb.mxu1 %v1675_v62  ;;  %1052 = vmatpush.bf16.msrb.mxu2 %v1771_v63  ;;  %v1855_v14 = vor.u32 %v2076_v13, %v1854_v12  ;;  %v1747_v23 = vor.u32 %v2049_v21, %v1746_v20  ;;  %v1842_v24 = vld [vmem:[#allocation4 + $0x2a0] sm:$0xf]  ;;  %v1542_v27 = vld [vmem:[#allocation4 + $0x48] sm:$0xf]  ;;  %v1998_v28 = vld [vmem:[#allocation4 + $0x50] sm:$0xf0] }
  0x22   :  { %v1638_v29 = vld [vmem:[#allocation4 + $0x108] sm:$0xf]  ;;  %v2022_v31 = vld [vmem:[#allocation4 + $0x110] sm:$0xf0]  ;;  %v1614_v55 = vld [vmem:[#allocation4 + $0xd8] sm:$0xf] }
  0x23   :  { %1065 = vmatpush.bf16.msra.mxu3 %v1867_v2  ;;  %v2016_v57 = vld [vmem:[#allocation4 + $0xe0] sm:$0xf0]  ;;  %v1710_v58 = vld [vmem:[#allocation4 + $0x198] sm:$0xf]  ;;  %v1506_v1 = vld [vmem:[#allocation4] sm:$0xf] }
  0x24   :  { %1027 = vmatpush.bf16.msra.mxu0 %v1567_v6  ;;  %v2040_v59 = vld [vmem:[#allocation4 + $0x1a0] sm:$0xf0]  ;;  %v1615_v60 = vor.u32 %v2016_v57, %v1614_v55  ;;  %v1806_v62 = vld [vmem:[#allocation4 + $0x258] sm:$0xf]  ;;  %v1989_v2 = vld [vmem:[#allocation4 + $0x8] sm:$0xf0] }
  0x25   :  { %1040 = vmatpush.bf16.msrb.mxu1 %v1663_v10  ;;  %v1711_v61 = vor.u32 %v2040_v59, %v1710_v58  ;;  %v2064_v63 = vld [vmem:[#allocation4 + $0x260] sm:$0xf0]  ;;  %v1602_v3 = vld [vmem:[#allocation4 + $0xc0] sm:$0xf]  ;;  %v1507_v4 = vor.u32 %v1989_v2, %v1506_v1  ;;  %v2013_v5 = vld [vmem:[#allocation4 + $0xc8] sm:$0xf0] }
  0x26   :  { %v1807_v0 = vor.u32 %v2064_v63, %v1806_v62  ;;  %v1698_v6 = vld [vmem:[#allocation4 + $0x180] sm:$0xf]  ;;  %v2037_v7 = vld [vmem:[#allocation4 + $0x188] sm:$0xf0]  ;;  %v1784_v20 = vld [vmem:[#allocation4 + $0x234] sm:$0xf0] }
  0x27   :  { %1066 = vmatpush.bf16.msra.mxu3 %v1855_v14  ;;  %v1794_v10 = vld [vmem:[#allocation4 + $0x240] sm:$0xf]  ;;  %v2009_v12 = vld [vmem:[#allocation4 + $0xac] sm:$0xf]  ;;  %v1592_v14 = vld [vmem:[#allocation4 + $0xb4] sm:$0xf0] }
  0x28   :  { %v2081_v21 = vld [vmem:[#allocation4 + $0x2ec] sm:$0xf]  ;;  %v2024_v55 = vld [vmem:[#allocation4 + $0x124] sm:$0xf]  ;;  %v1748_v58 = vld [vmem:[#allocation4 + $0x1ec] sm:$0xf0] }
  0x29   :  { %v2048_v57 = vld [vmem:[#allocation4 + $0x1e4] sm:$0xf]  ;;  %v1844_v63 = vld [vmem:[#allocation4 + $0x2ac] sm:$0xf0] }
  0x2a   :  { %1503 = vmatmul.msk.bf16.vlgmr.msrb.gmra.mxu3 %vm318_vm0, %v288_v8  ;;  %v1758_v8 = vld [vmem:[#allocation4 + $0x1f8] sm:$0xf]  ;;  %v2072_v62 = vld [vmem:[#allocation4 + $0x2a4] sm:$0xf]  ;;  %v1751_v2 = vor.u32 %v2048_v57, %v1748_v58 }
  0x2b   :  { %v1759_v11 = vor.u32 %v2052_v9, %v1758_v8  ;;  %v1603_v8 = vor.u32 %v2013_v5, %v1602_v3  ;;  %v1699_v9 = vor.u32 %v2037_v7, %v1698_v6  ;;  %v1544_v3 = vld [vmem:[#allocation4 + $0x54] sm:$0xf0]  ;;  %v1847_v6 = vor.u32 %v2072_v62, %v1844_v63 }
  0x2c   :  { %v1640_v7 = vld [vmem:[#allocation4 + $0x114] sm:$0xf0] }
  0x2d   :  { %1053 = vmatpush.bf16.msrb.mxu2 %v1759_v11  ;;  %v2061_v11 = vld [vmem:[#allocation4 + $0x248] sm:$0xf0] }
  0x2e   :  { %v1795_v13 = vor.u32 %v2061_v11, %v1794_v10  ;;  %v2069_v10 = vld [vmem:[#allocation4 + $0x28c] sm:$0xf]  ;;  %v1832_v11 = vld [vmem:[#allocation4 + $0x294] sm:$0xf0] }
  0x31   :  { %1054 = vmatpush.bf16.msrb.mxu2 %v1747_v23  ;;  %v1880_v23 = vld [vmem:[#allocation4 + $0x2f4] sm:$0xf0] }
  0x99   :  { %v344_v17 = vpop.f32.mrf.mxu1 }
  0x9a   :  { %v345_v25 = vadd.f32 %v344_v17, %v291_v15  ;;  %v1554_v15 = vld [vmem:[#allocation4 + $0x60] sm:$0xf] }
  0x9b   :  { %v1650_v17 = vld [vmem:[#allocation4 + $0x120] sm:$0xf] }
  0x9c   :  { %v380_v44 = vmul.f32 %v345_v25, %v345_v25  ;;  %v1651_v22 = vor.u32 %v2025_v19, %v1650_v17  ;;  %v1595_v17 = vor.u32 %v2009_v12, %v1592_v14  ;;  %v2057_v19 = vld [vmem:[#allocation4 + $0x22c] sm:$0xf] }
  0x9d   :  { %v331_v30 = vpop.f32.mrf.mxu3 }
  0x9e   :  { %v332_v32 = vadd.f32 %v331_v30, %v290_v16  ;;  %v357_v33 = vpop.f32.mrf.mxu2  ;;  %v2001_v16 = vld [vmem:[#allocation4 + $0x68] sm:$0xf0]  ;;  %1041 = vmatpush.bf16.msrb.mxu1 %v1651_v22  ;;  %v1543_v30 = vor.u32 %v1998_v28, %v1542_v27  ;;  %v1787_v22 = vor.u32 %v2057_v19, %v1784_v20  ;;  %v1883_v27 = vor.u32 %v2081_v21, %v1880_v23  ;;  %v2018_v19 = vld [vmem:[#allocation4 + $0xf4] sm:$0xf]  ;;  %v1628_v20 = vld [vmem:[#allocation4 + $0xfc] sm:$0xf0] }
  0x9f   :  { %v358_v39 = vadd.f32 %v357_v33, %v292_v37  ;;  %v1555_v18 = vor.u32 %v2001_v16, %v1554_v15  ;;  %v2046_v33 = vld [vmem:[#allocation4 + $0x1d0] sm:$0xf0]  ;;  %v1830_v37 = vld [vmem:[#allocation4 + $0x288] sm:$0xf]  ;;  %v2033_v15 = vld [vmem:[#allocation4 + $0x16c] sm:$0xf] }
  0xa0   :  { %v2315_v34 = vpack.c.bf16 %v345_v25, %v332_v32  ;;  %v374_v41 = vadd.f32 %v345_v25, %v332_v32  ;;  %v379_v43 = vmul.f32 %v332_v32, %v332_v32  ;;  %v2073_v25 = vld [vmem:[#allocation4 + $0x2a8] sm:$0xf0]  ;;  %v1734_v32 = vld [vmem:[#allocation4 + $0x1c8] sm:$0xf]  ;;  %v1688_v16 = vld [vmem:[#allocation4 + $0x174] sm:$0xf0] }
  0xa1   :  { %v346_v35 = vpop.f32.mrf.mxu1  ;;  %v381_v49 = vmul.f32 %v358_v39, %v358_v39  ;;  %1028 = vmatpush.bf16.msra.mxu0 %v1555_v18  ;;  %v1843_v26 = vor.u32 %v2073_v25, %v1842_v24  ;;  %v1691_v18 = vor.u32 %v2033_v15, %v1688_v16  ;;  %v2006_v24 = vld [vmem:[#allocation4 + $0x94] sm:$0xf]  ;;  %v1580_v25 = vld [vmem:[#allocation4 + $0x9c] sm:$0xf0]  ;;  %v106_v16 = vld [vmem:[%s2398_s3] sm:$0xf] }
  0xa2   :  { %v375_v46 = vadd.f32 %v374_v41, %v358_v39  ;;  %v383_v50 = vadd.f32 %v380_v44, %v379_v43  ;;  %v1639_v35 = vor.u32 %v2022_v31, %v1638_v29  ;;  %v1995_v41 = vld [vmem:[#allocation4 + $0x38] sm:$0xf0]  ;;  %v1583_v28 = vor.u32 %v2006_v24, %v1580_v25  ;;  %v2030_v29 = vld [vmem:[#allocation4 + $0x154] sm:$0xf]  ;;  %v1724_v24 = vld [vmem:[#allocation4 + $0x1bc] sm:$0xf0] }
  0xa3   :  { %1067 = vmatpush.bf16.msra.mxu3 %v1843_v26  ;;  %v2019_v44 = vld [vmem:[#allocation4 + $0xf8] sm:$0xf0]  ;;  %v2054_v31 = vld [vmem:[#allocation4 + $0x214] sm:$0xf]  ;;  %431 = vst [vmem:[#allocation1] ss:$9 sm:$0xff] %v106_v16  ;;  %v407_v57 = vunpack.c.l.bf16 %v2315_v34  ;;  %v408_v58 = vunpack.c.h.bf16 %v2315_v34 }
  0xa4   :  { %v384_v53 = vadd.f32 %v383_v50, %v381_v49  ;;  %1042 = vmatpush.bf16.msrb.mxu1 %v1639_v35  ;;  %v1818_v50 = vld [vmem:[#allocation4 + $0x270] sm:$0xf]  ;;  %v2078_v35 = vld [vmem:[#allocation4 + $0x2d4] sm:$0xf] }
  0xa5   :  { %v333_v36 = vpop.f32.mrf.mxu3  ;;  %1029 = vmatpush.bf16.msra.mxu0 %v1543_v30  ;;  %v1676_v30 = vld [vmem:[#allocation4 + $0x15c] sm:$0xf0]  ;;  %v1994_v15 = vld [vmem:[#allocation4 + $0x34] sm:$0xf] }
  0xa6   :  { %v359_v38 = vpop.f32.mrf.mxu2  ;;  %v1735_v36 = vor.u32 %v2046_v33, %v1734_v32  ;;  %v1679_v32 = vor.u32 %v2030_v29, %v1676_v30  ;;  %v1772_v33 = vld [vmem:[#allocation4 + $0x21c] sm:$0xf0]  ;;  %v2042_v23 = vld [vmem:[#allocation4 + $0x1b4] sm:$0xf]  ;;  %v1631_v29 = vor.u32 %v2018_v19, %v1628_v20  ;;  %v1991_v30 = vld [vmem:[#allocation4 + $0x1c] sm:$0xf] }
  0xa7   :  { %v2070_v38 = vld [vmem:[#allocation4 + $0x290] sm:$0xf0] }
  0xa8   :  { %1055 = vmatpush.bf16.msrb.mxu2 %v1735_v36  ;;  %v1775_v36 = vor.u32 %v2054_v31, %v1772_v33  ;;  %v2066_v25 = vld [vmem:[#allocation4 + $0x274] sm:$0xf]  ;;  %v1520_v31 = vld [vmem:[#allocation4 + $0x24] sm:$0xf0]  ;;  %v2015_v33 = vld [vmem:[#allocation4 + $0xdc] sm:$0xf] }
  0xad   :  { %v370_v42 = vpop.f32.mrf.mxu3 }
  0xae   :  { %v371_v45 = vadd.f32 %v370_v42, %v293_v40  ;;  %v1530_v40 = vld [vmem:[#allocation4 + $0x30] sm:$0xf] }
  0xaf   :  { %v1626_v42 = vld [vmem:[#allocation4 + $0xf0] sm:$0xf]  ;;  %v1531_v43 = vor.u32 %v1995_v41, %v1530_v40  ;;  %v1568_v40 = vld [vmem:[#allocation4 + $0x84] sm:$0xf0]  ;;  %v2027_v41 = vld [vmem:[#allocation4 + $0x13c] sm:$0xf] }
  0xb0   :  { %v2317_v47 = vpack.c.bf16 %v371_v45, %v358_v39  ;;  %v376_v48 = vadd.f32 %v375_v46, %v371_v45  ;;  %v382_v51 = vmul.f32 %v371_v45, %v371_v45  ;;  %v1831_v39 = vor.u32 %v2070_v38, %v1830_v37  ;;  %v1722_v45 = vld [vmem:[#allocation4 + $0x1b0] sm:$0xf]  ;;  %v2043_v46 = vld [vmem:[#allocation4 + $0x1b8] sm:$0xf0]  ;;  %v1868_v37 = vld [vmem:[#allocation4 + $0x2dc] sm:$0xf0] }
  0xb1   :  { %v1723_v49 = vor.u32 %v2043_v46, %v1722_v45  ;;  %1030 = vmatpush.bf16.msra.mxu0 %v1531_v43  ;;  %v1871_v38 = vor.u32 %v2078_v35, %v1868_v37  ;;  %v1664_v43 = vld [vmem:[#allocation4 + $0x144] sm:$0xf0]  ;;  %v2039_v37 = vld [vmem:[#allocation4 + $0x19c] sm:$0xf] }
  0xb2   :  { %377 = vadd.xlane.f32.xlu0 %v376_v48  ;;  %v385_v54 = vadd.f32 %v384_v53, %v382_v51  ;;  %1068 = vmatpush.bf16.msra.mxu3 %v1831_v39  ;;  %v1627_v48 = vor.u32 %v2019_v44, %v1626_v42  ;;  %v2067_v51 = vld [vmem:[#allocation4 + $0x278] sm:$0xf0]  ;;  %v1518_v53 = vld [vmem:[#allocation4 + $0x18] sm:$0xf]  ;;  %v1760_v45 = vld [vmem:[#allocation4 + $0x204] sm:$0xf0]  ;;  %v409_v62 = vunpack.c.l.bf16 %v2317_v47  ;;  %v410_v63 = vunpack.c.h.bf16 %v2317_v47 }
  0xb3   :  { %1056 = vmatpush.bf16.msrb.mxu2 %v1723_v49  ;;  %v2003_v39 = vld [vmem:[#allocation4 + $0x7c] sm:$0xf]  ;;  %v1616_v35 = vld [vmem:[#allocation4 + $0xe4] sm:$0xf0]  ;;  %v237_v47 = vld [vmem:[%s2402_s7] sm:$0x7] }
  0xb4   :  { %1043 = vmatpush.bf16.msrb.mxu1 %v1627_v48  ;;  %v1571_v42 = vor.u32 %v2003_v39, %v1568_v40  ;;  %v2051_v44 = vld [vmem:[#allocation4 + $0x1fc] sm:$0xf]  ;;  %v1667_v48 = vor.u32 %v2027_v41, %v1664_v43  ;;  %v1808_v40 = vld [vmem:[#allocation4 + $0x264] sm:$0xf0]  ;;  %v1619_v43 = vor.u32 %v2015_v33, %v1616_v35 }
  0xb5   :  { %v372_v52 = vpop.f32.mrf.mxu3  ;;  %v1763_v49 = vor.u32 %v2051_v44, %v1760_v45  ;;  %v2063_v39 = vld [vmem:[#allocation4 + $0x25c] sm:$0xf] }
  0xb6   :  { %v1819_v52 = vor.u32 %v2067_v51, %v1818_v50  ;;  %v2075_v50 = vld [vmem:[#allocation4 + $0x2bc] sm:$0xf]  ;;  %v1856_v51 = vld [vmem:[#allocation4 + $0x2c4] sm:$0xf0]  ;;  %v1811_v45 = vor.u32 %v2063_v39, %v1808_v40 }
  0xb7   :  { %1057 = vmatpush.bf16.msrb.mxu2 %v1711_v61 }
  0xb8   :  { %1069 = vmatpush.bf16.msra.mxu3 %v1819_v52  ;;  %1044 = vmatpush.bf16.msrb.mxu1 %v1615_v60  ;;  %v1859_v52 = vor.u32 %v2075_v50, %v1856_v51  ;;  %v432_v51 = vld [vmem:[#allocation1] sm:$0xff] }
  0xb9   :  { %v436_v16 = vpack.i.b16 %v432_v51, %v432_v51 }
  0xba   :  { %386 = vadd.xlane.f32.xlu0 %v385_v54  ;;  %v1992_v54 = vld [vmem:[#allocation4 + $0x20] sm:$0xf0] }
  0xbb   :  { %v1519_v56 = vor.u32 %v1992_v54, %v1518_v53  ;;  %1058 = vmatpush.bf16.msrb.mxu2 %v1699_v9  ;;  %v2000_v53 = vld [vmem:[#allocation4 + $0x64] sm:$0xf]  ;;  %v1556_v54 = vld [vmem:[#allocation4 + $0x6c] sm:$0xf0]  ;;  %v1736_v9 = vld [vmem:[#allocation4 + $0x1d4] sm:$0xf0] }
  0xbc   :  { %1070 = vmatpush.bf16.msra.mxu3 %v1807_v0  ;;  %1045 = vmatpush.bf16.msrb.mxu1 %v1603_v8  ;;  %v1559_v60 = vor.u32 %v2000_v53, %v1556_v54  ;;  %v1997_v0 = vld [vmem:[#allocation4 + $0x4c] sm:$0xf]  ;;  %v435_v54 = vld [vmem:[#allocation1 + $0x1b] sm:$0xff] }
  0xbd   :  { %1031 = vmatpush.bf16.msra.mxu0 %v1519_v56  ;;  %v1652_v56 = vld [vmem:[#allocation4 + $0x12c] sm:$0xf0]  ;;  %v2045_v8 = vld [vmem:[#allocation4 + $0x1cc] sm:$0xf] }
  0xbe   :  { %v1655_v61 = vor.u32 %v2024_v55, %v1652_v56  ;;  %v434_v53 = vld [vmem:[#allocation1 + $0x12] sm:$0xff]  ;;  %v1988_v55 = vld [vmem:[#allocation4 + $0x4] sm:$0xf] }
  0xbf   :  { %1103 = vmatpush.bf16.msra.mxu2 %v1787_v22  ;;  %v1835_v22 = vor.u32 %v2069_v10, %v1832_v11  ;;  %v1508_v56 = vld [vmem:[#allocation4 + $0xc] sm:$0xf0]  ;;  %v442_v20 = vpack.i.b16 %v434_v53, %v434_v53 }
  0xc0   :  { %1071 = vmatpush.bf16.msra.mxu3 %v1795_v13  ;;  %1090 = vmatpush.bf16.msra.mxu1 %v1691_v18  ;;  %v1547_v13 = vor.u32 %v1997_v0, %v1544_v3  ;;  %v1532_v18 = vld [vmem:[#allocation4 + $0x3c] sm:$0xf0]  ;;  %v1796_v10 = vld [vmem:[#allocation4 + $0x24c] sm:$0xf0] }
  0xc1   :  { %1032 = vmatpush.bf16.msra.mxu0 %v1507_v4  ;;  %v2021_v4 = vld [vmem:[#allocation4 + $0x10c] sm:$0xf]  ;;  %v444_v33 = vperm.slane %v442_v20, 0 }
  0xc2   :  { %v1643_v14 = vor.u32 %v2021_v4, %v1640_v7 }
  0xc3   :  { %1104 = vmatpush.bf16.msra.mxu2 %v1775_v36 }
  0xc4   :  { %1116 = vmatpush.bf16.msrb.mxu3 %v1883_v27  ;;  %1091 = vmatpush.bf16.msra.mxu1 %v1679_v32  ;;  %v1727_v32 = vor.u32 %v2042_v23, %v1724_v24 }
  0xc5   :  { %1077 = vmatpush.bf16.msrb.mxu0 %v1595_v17  ;;  %v1739_v17 = vor.u32 %v2045_v8, %v1736_v9 }
  0xc7   :  { %1105 = vmatpush.bf16.msra.mxu2 %v1763_v49 }
  0xc8   :  { %1117 = vmatpush.bf16.msrb.mxu3 %v1871_v38  ;;  %1092 = vmatpush.bf16.msra.mxu1 %v1667_v48  ;;  %v1712_v38 = vld [vmem:[#allocation4 + $0x1a4] sm:$0xf0]  ;;  %v107_v48 = vld [vmem:[%s2399_s4] sm:$0xf] }
  0xc9   :  { %1078 = vmatpush.bf16.msrb.mxu0 %v1583_v28  ;;  %v1535_v28 = vor.u32 %v1994_v15, %v1532_v18  ;;  %v1715_v44 = vor.u32 %v2039_v37, %v1712_v38 }
  0xcb   :  { %1106 = vmatpush.bf16.msra.mxu2 %v1751_v2  ;;  %v2036_v2 = vld [vmem:[#allocation4 + $0x184] sm:$0xf] }
  0xcc   :  { %1118 = vmatpush.bf16.msrb.mxu3 %v1859_v52  ;;  %1093 = vmatpush.bf16.msra.mxu1 %v1655_v61  ;;  %v433_v52 = vld [vmem:[#allocation1 + $0x9] sm:$0xff]  ;;  %v1604_v61 = vld [vmem:[#allocation4 + $0xcc] sm:$0xf0] }
  0xcd   :  { %1079 = vmatpush.bf16.msrb.mxu0 %v1571_v42  ;;  %v1523_v42 = vor.u32 %v1991_v30, %v1520_v31  ;;  %463 = vst [vmem:[#allocation1] ss:$9 sm:$0xff] %v107_v48 }
  0xcf   :  { %1107 = vmatpush.bf16.msra.mxu2 %v1739_v17  ;;  %v439_v17 = vpack.i.b16 %v433_v52, %v433_v52 }
  0xd0   :  { %1119 = vmatpush.bf16.msrb.mxu3 %v1847_v6  ;;  %1094 = vmatpush.bf16.msra.mxu1 %v1643_v14  ;;  %v2060_v6 = vld [vmem:[#allocation4 + $0x244] sm:$0xf] }
  0xd1   :  { %1080 = vmatpush.bf16.msrb.mxu0 %v1559_v60  ;;  %v2012_v60 = vld [vmem:[#allocation4 + $0xc4] sm:$0xf]  ;;  %v1799_v11 = vor.u32 %v2060_v6, %v1796_v10  ;;  %v441_v30 = vperm.slane %v439_v17, 0  ;;  %v1886_v17 = vld [vmem:[#allocation4 + $0x2f0] sm:$0xf] }
  0xd3   :  { %1108 = vmatpush.bf16.msra.mxu2 %v1727_v32 }
  0xd4   :  { %1120 = vmatpush.bf16.msrb.mxu3 %v1835_v22  ;;  %1095 = vmatpush.bf16.msra.mxu1 %v1631_v29  ;;  %v464_v18 = vld [vmem:[#allocation1] sm:$0xff]  ;;  %v465_v19 = vld [vmem:[#allocation1 + $0x9] sm:$0xff]  ;;  %v466_v22 = vld [vmem:[#allocation1 + $0x12] sm:$0xff]  ;;  %v438_v29 = vperm.slane %v436_v16, 0 }
  0xd5   :  { %1081 = vmatpush.bf16.msrb.mxu0 %v1547_v13  ;;  %v467_v23 = vld [vmem:[#allocation1 + $0x1b] sm:$0xff]  ;;  %v471_v37 = vpack.i.b16 %v465_v19, %v465_v19  ;;  %v474_v38 = vpack.i.b16 %v466_v22, %v466_v22  ;;  %v2059_v16 = vld [vmem:[#allocation4 + $0x238] sm:$0xf0] }
  0xd6   :  { %1231 = vst [vmem:[#allocation1] ss:$9 sm:$0xff] %v237_v47  ;;  %v477_v39 = vpack.i.b16 %v467_v23, %v467_v23  ;;  %v1694_v47 = vld [vmem:[#allocation4 + $0x170] sm:$0xf]  ;;  %v2083_v22 = vld [vmem:[#allocation4 + $0x2f8] sm:$0xf0] }
  0xd7   :  { %1109 = vmatpush.bf16.msra.mxu2 %v1715_v44  ;;  %v452_v44 = vunpack.c.l.bf16 %v438_v29  ;;  %v473_v53 = vperm.slane %v471_v37, 0  ;;  %v1586_v29 = vld [vmem:[#allocation4 + $0x98] sm:$0xf]  ;;  %v2056_v37 = vld [vmem:[#allocation4 + $0x220] sm:$0xf0] }
  0xd8   :  { %1096 = vmatpush.bf16.msra.mxu1 %v1619_v43 }
  0xd9   :  { %1082 = vmatpush.bf16.msrb.mxu0 %v1535_v28 }
  0xdd   :  { %1083 = vmatpush.bf16.msrb.mxu0 %v1523_v42 }
 0x125   :  { %v378_v26 = vpop.xlane.xlu0 %377 }
 0x126   :  { %v2319_v46 = vmul.f32 0.0025, %v378_v26  ;;  %v1820_v26 = vld [vmem:[#allocation4 + $0x27c] sm:$0xf0] }
 0x127   :  { %v1823_v36 = vor.u32 %v2066_v25, %v1820_v26 }
 0x128   :  { %v390_v5 = vmul.f32 %v2319_v46, %v2319_v46  ;;  %v406_v41 = vpack.c.bf16 %v2319_v46, %v2319_v46 }
 0x129   :  { %1121 = vmatpush.bf16.msrb.mxu3 %v1823_v36  ;;  %v468_v36 = vpack.i.b16 %v464_v18, %v464_v18 }
 0x12a   :  { %v411_v50 = vunpack.c.l.bf16 %v406_v41 }
 0x12b   :  { %v470_v52 = vperm.slane %v468_v36, 0  ;;  %v1778_v36 = vld [vmem:[#allocation4 + $0x218] sm:$0xf] }
 0x12c   :  { %v412_v3 = vsub.f32 %v407_v57, %v411_v50  ;;  %v413_v4 = vsub.f32 %v408_v58, %v411_v50  ;;  %v414_v7 = vsub.f32 %v409_v62, %v411_v50  ;;  %v415_v8 = vsub.f32 %v410_v63, %v411_v50 }
 0x12d   :  { %v387_v59 = vpop.xlane.xlu0 %386  ;;  %1122 = vmatpush.bf16.msrb.mxu3 %v1811_v45  ;;  %v453_v45 = vunpack.c.l.bf16 %v441_v30  ;;  %v454_v50 = vunpack.c.l.bf16 %v444_v33  ;;  %v484_v63 = vunpack.c.l.bf16 %v470_v52  ;;  %v2008_v30 = vld [vmem:[#allocation4 + $0xa0] sm:$0xf0]  ;;  %v1682_v33 = vld [vmem:[#allocation4 + $0x158] sm:$0xf]  ;;  %v1862_v52 = vld [vmem:[#allocation4 + $0x2c0] sm:$0xf] }
 0x12e   :  { %v389_v1 = vmul.f32 0.0025, %v387_v59  ;;  %v1511_v59 = vor.u32 %v1988_v55, %v1508_v56  ;;  %v416_v13 = vpack.c.bf16 %v413_v4, %v412_v3  ;;  %v417_v14 = vpack.c.bf16 %v415_v8, %v414_v7 }
 0x130   :  { %v391_v12 = vsub.f32 %v389_v1, %v390_v5  ;;  %v1607_v1 = vor.u32 %v2012_v60, %v1604_v61  ;;  %1084 = vmatpush.bf16.msrb.mxu0 %v1511_v59  ;;  %v1700_v5 = vld [vmem:[#allocation4 + $0x18c] sm:$0xf0]  ;;  %v419_v25 = vunpack.c.l.bf16 %v416_v13  ;;  %v421_v28 = vunpack.c.l.bf16 %v417_v14 }
 0x131   :  { %v1703_v9 = vor.u32 %v2036_v2, %v1700_v5  ;;  %1123 = vmatpush.bf16.msrb.mxu3 %v1799_v11  ;;  %v422_v31 = vunpack.c.h.bf16 %v417_v14  ;;  %v2035_v14 = vld [vmem:[#allocation4 + $0x178] sm:$0xf0] }
 0x132   :  { %v392_v21 = vmax.f32 %v391_v12, 0.0  ;;  %1097 = vmatpush.bf16.msra.mxu1 %v1607_v1 }
 0x133   :  { %1110 = vmatpush.bf16.msra.mxu2 %v1703_v9 }
 0x134   :  { %v2326_v27 = vadd.f32 1e-05, %v392_v21  ;;  %v445_v21 = vpack.i.b16 %v435_v54, %v435_v54  ;;  %v479_v54 = vperm.slane %v477_v39, 0  ;;  %v2080_v39 = vld [vmem:[#allocation4 + $0x2e0] sm:$0xf0] }
 0x136   :  { %2119 = vrsqrt.f32 %v2326_v27  ;;  %vm400_vm2 = vweird.f32 %v2326_v27  ;;  %v447_v35 = vperm.slane %v445_v21, 0  ;;  %v487_v4 = vunpack.c.l.bf16 %v479_v54 }
 0x138   :  { %v455_v51 = vunpack.c.l.bf16 %v447_v35  ;;  %v2032_v35 = vld [vmem:[#allocation4 + $0x160] sm:$0xf0] }
 0x13c   :  { %v2120_v49 = vpop.eup %2119 }
 0x13d   :  { %v395_v46 = vmul.f32 %v2120_v49, %v2326_v27  ;;  %vm401_vm1 = vweird.f32 %v2120_v49  ;;  %v420_v27 = vunpack.c.h.bf16 %v416_v13  ;;  %v2011_v13 = vld [vmem:[#allocation4 + $0xb8] sm:$0xf0] }
 0x13e   :  { %vm402_vm3 = vmor %vm400_vm2, %vm401_vm1 }
 0x13f   :  { %v396_v0 = vmul.f32 %v2120_v49, %v395_v46  ;;  %v476_v46 = vperm.slane %v474_v38, 0  ;;  %v1874_v38 = vld [vmem:[#allocation4 + $0x2d8] sm:$0xf] }
 0x141   :  { %v397_v34 = vmul.f32 0.5, %v396_v0  ;;  %v485_v0 = vunpack.c.l.bf16 %v473_v53  ;;  %v486_v3 = vunpack.c.l.bf16 %v476_v46  ;;  %v2077_v53 = vld [vmem:[#allocation4 + $0x2c8] sm:$0xf0] }
 0x143   :  { %v398_v12 = vsub.f32 1.5, %v397_v34  ;;  %v1598_v34 = vld [vmem:[#allocation4 + $0xb0] sm:$0xf] }
 0x144   :  { %v1599_v23 = vor.u32 %v2011_v13, %v1598_v34  ;;  %v1742_v34 = vld [vmem:[#allocation4 + $0x1d0] sm:$0xf] }
 0x145   :  { %v399_v15 = vmul.f32 %v2120_v49, %v398_v12 }
 0x147   :  { %v403_v24 = vsel %vm402_vm3, %v2120_v49, %v399_v15  ;;  %v1790_v15 = vld [vmem:[#allocation4 + $0x230] sm:$0xf] }
 0x148   :  { %v418_v26 = vpack.c.bf16 %v403_v24, %v403_v24  ;;  %v1695_v24 = vor.u32 %v2035_v14, %v1694_v47  ;;  %v1538_v47 = vld [vmem:[#allocation4 + $0x38] sm:$0xf]  ;;  %v1996_v14 = vld [vmem:[#allocation4 + $0x40] sm:$0xf0] }
 0x14a   :  { %v423_v32 = vunpack.c.l.bf16 %v418_v26 }
 0x14c   :  { %v424_v40 = vmul.f32 %v423_v32, %v419_v25  ;;  %v425_v41 = vmul.f32 %v423_v32, %v420_v27  ;;  %v426_v42 = vmul.f32 %v423_v32, %v421_v28  ;;  %v427_v43 = vmul.f32 %v423_v32, %v422_v31 }
 0x14d   :  { %v1791_v31 = vor.u32 %v2059_v16, %v1790_v15  ;;  %v1887_v32 = vor.u32 %v2083_v22, %v1886_v17  ;;  %v1634_v17 = vld [vmem:[#allocation4 + $0xf8] sm:$0xf]  ;;  %v2068_v22 = vld [vmem:[#allocation4 + $0x280] sm:$0xf0] }
 0x14e   :  { %v428_v48 = vpack.c.bf16 %v425_v41, %v424_v40  ;;  %v429_v49 = vpack.c.bf16 %v427_v43, %v426_v42  ;;  %v1587_v40 = vor.u32 %v2008_v30, %v1586_v29  ;;  %v1683_v41 = vor.u32 %v2032_v35, %v1682_v33  ;;  %v1574_v42 = vld [vmem:[#allocation4 + $0x80] sm:$0xf]  ;;  %v2005_v43 = vld [vmem:[#allocation4 + $0x88] sm:$0xf0] }
 0x14f   :  { %v1575_v46 = vor.u32 %v2005_v43, %v1574_v42  ;;  %v1526_v29 = vld [vmem:[#allocation4 + $0x20] sm:$0xf]  ;;  %v1993_v30 = vld [vmem:[#allocation4 + $0x28] sm:$0xf0]  ;;  %v1514_v42 = vld [vmem:[#allocation4 + $0x8] sm:$0xf] }
 0x150   :  { %v448_v55 = vunpack.c.l.bf16 %v428_v48  ;;  %v449_v56 = vunpack.c.h.bf16 %v428_v48  ;;  %v450_v57 = vunpack.c.l.bf16 %v429_v49  ;;  %v451_v58 = vunpack.c.h.bf16 %v429_v49  ;;  %v1670_v48 = vld [vmem:[#allocation4 + $0x140] sm:$0xf]  ;;  %v2029_v49 = vld [vmem:[#allocation4 + $0x148] sm:$0xf0]  ;;  %v1990_v43 = vld [vmem:[#allocation4 + $0x10] sm:$0xf0] }
 0x151   :  { %v1671_v54 = vor.u32 %v2029_v49, %v1670_v48  ;;  %v1622_v33 = vld [vmem:[#allocation4 + $0xe0] sm:$0xf]  ;;  %v2017_v35 = vld [vmem:[#allocation4 + $0xe8] sm:$0xf0]  ;;  %v1610_v48 = vld [vmem:[#allocation4 + $0xc8] sm:$0xf] }
 0x152   :  { %v456_v59 = vmul.f32 %v452_v44, %v448_v55  ;;  %v457_v60 = vmul.f32 %v453_v45, %v449_v56  ;;  %v458_v61 = vmul.f32 %v454_v50, %v450_v57  ;;  %v459_v62 = vmul.f32 %v455_v51, %v451_v58  ;;  %v1766_v50 = vld [vmem:[#allocation4 + $0x200] sm:$0xf]  ;;  %v2053_v51 = vld [vmem:[#allocation4 + $0x208] sm:$0xf0]  ;;  %v1562_v55 = vld [vmem:[#allocation4 + $0x68] sm:$0xf] }
 0x153   :  { %v1779_v44 = vor.u32 %v2056_v37, %v1778_v36  ;;  %v1875_v45 = vor.u32 %v2080_v39, %v1874_v38  ;;  %v2002_v56 = vld [vmem:[#allocation4 + $0x70] sm:$0xf0]  ;;  %v1767_v57 = vor.u32 %v2053_v51, %v1766_v50  ;;  %v1863_v58 = vor.u32 %v2077_v53, %v1862_v52  ;;  %v1718_v36 = vld [vmem:[#allocation4 + $0x1a0] sm:$0xf]  ;;  %v2041_v37 = vld [vmem:[#allocation4 + $0x1a8] sm:$0xf0] }
 0x154   :  { %v460_v1 = vpack.c.bf16 %v457_v60, %v456_v59  ;;  %v461_v2 = vpack.c.bf16 %v459_v62, %v458_v61  ;;  %v1658_v59 = vld [vmem:[#allocation4 + $0x128] sm:$0xf]  ;;  %v2026_v60 = vld [vmem:[#allocation4 + $0x130] sm:$0xf0]  ;;  %v1814_v38 = vld [vmem:[#allocation4 + $0x260] sm:$0xf] }
 0x155   :  { %v1754_v61 = vld [vmem:[#allocation4 + $0x1e8] sm:$0xf]  ;;  %v2050_v62 = vld [vmem:[#allocation4 + $0x1f0] sm:$0xf0]  ;;  %v2065_v39 = vld [vmem:[#allocation4 + $0x268] sm:$0xf0] }
 0x156   :  { %v480_v5 = vunpack.c.l.bf16 %v460_v1  ;;  %v481_v6 = vunpack.c.h.bf16 %v460_v1  ;;  %v482_v7 = vunpack.c.l.bf16 %v461_v2  ;;  %v483_v8 = vunpack.c.h.bf16 %v461_v2  ;;  %v2014_v49 = vld [vmem:[#allocation4 + $0xd0] sm:$0xf0]  ;;  %v1706_v50 = vld [vmem:[#allocation4 + $0x188] sm:$0xf] }
 0x157   :  { %v1563_v1 = vor.u32 %v2002_v56, %v1562_v55  ;;  %v1659_v2 = vor.u32 %v2026_v60, %v1658_v59  ;;  %v2038_v51 = vld [vmem:[#allocation4 + $0x190] sm:$0xf0]  ;;  %v1802_v52 = vld [vmem:[#allocation4 + $0x248] sm:$0xf] }
 0x158   :  { %v488_v9 = vadd.f32 %v484_v63, %v480_v5  ;;  %v489_v10 = vadd.f32 %v485_v0, %v481_v6  ;;  %v490_v11 = vadd.f32 %v486_v3, %v482_v7  ;;  %v491_v12 = vadd.f32 %v487_v4, %v483_v8  ;;  %v1850_v63 = vld [vmem:[#allocation4 + $0x2a8] sm:$0xf]  ;;  %v2074_v0 = vld [vmem:[#allocation4 + $0x2b0] sm:$0xf0]  ;;  %v1550_v3 = vld [vmem:[#allocation4 + $0x50] sm:$0xf] }
 0x159   :  { %v1999_v4 = vld [vmem:[#allocation4 + $0x58] sm:$0xf0]  ;;  %v1755_v5 = vor.u32 %v2050_v62, %v1754_v61  ;;  %v1851_v6 = vor.u32 %v2074_v0, %v1850_v63  ;;  %v1646_v7 = vld [vmem:[#allocation4 + $0x110] sm:$0xf]  ;;  %v2062_v53 = vld [vmem:[#allocation4 + $0x250] sm:$0xf0]  ;;  %v1707_v55 = vor.u32 %v2038_v51, %v1706_v50 }
 0x15a   :  { %v498_v18 = vmax.f32 %v488_v9, 0.0  ;;  %v499_v19 = vmax.f32 %v489_v10, 0.0  ;;  %v500_v20 = vmax.f32 %v490_v11, 0.0  ;;  %v501_v21 = vmax.f32 %v491_v12, 0.0  ;;  %v2023_v8 = vld [vmem:[#allocation4 + $0x118] sm:$0xf0] }
 0x15b   :  { %v2047_v9 = vld [vmem:[#allocation4 + $0x1d8] sm:$0xf0]  ;;  %v1838_v10 = vld [vmem:[#allocation4 + $0x290] sm:$0xf]  ;;  %v1551_v12 = vor.u32 %v1999_v4, %v1550_v3  ;;  %v1647_v13 = vor.u32 %v2023_v8, %v1646_v7  ;;  %v1803_v56 = vor.u32 %v2062_v53, %v1802_v52  ;;  %v236_v63 = vld [vmem:[%s2401_s6] sm:$0x7] }
 0x15c   :  { %v2343_v25 = vpack.c.bf16 %v498_v18, %v498_v18  ;;  %v2345_v26 = vpack.c.bf16 %v499_v19, %v499_v19  ;;  %v2347_v27 = vpack.c.bf16 %v500_v20, %v500_v20  ;;  %v2349_v28 = vpack.c.bf16 %v501_v21, %v501_v21  ;;  %v2071_v11 = vld [vmem:[#allocation4 + $0x298] sm:$0xf0]  ;;  %v2020_v18 = vld [vmem:[#allocation4 + $0x100] sm:$0xf0]  ;;  %v1730_v19 = vld [vmem:[#allocation4 + $0x1b8] sm:$0xf] }
 0x15d   :  { %v1743_v15 = vor.u32 %v2047_v9, %v1742_v34  ;;  %v1839_v16 = vor.u32 %v2071_v11, %v1838_v10  ;;  %v2044_v20 = vld [vmem:[#allocation4 + $0x1c0] sm:$0xf0]  ;;  %v1826_v21 = vld [vmem:[#allocation4 + $0x278] sm:$0xf]  ;;  %v507_v0 = vperm.slane %v236_v63, 0  ;;  %v2097_v50 = vld [vmem:[#allocation7 + $0x68] sm:$0xff] }
 0x15e   :  { %1033 = vmatmul.bf16.vlgmr.msra.gmra.mxu0 %v2343_v25  ;;  %1046 = vmatmul.bf16.vlgmr.msrb.gmra.mxu1 %v2345_v26  ;;  %v2105_v51 = vld [vmem:[#allocation7 + $0xa8] sm:$0xff]  ;;  %v2088_v53 = vld [vmem:[#allocation7 + $0x20] sm:$0xff] }
 0x15f   :  { %1059 = vmatmul.bf16.vlgmr.msrb.gmra.mxu2 %v2347_v27  ;;  %1072 = vmatmul.bf16.vlgmr.msra.gmra.mxu3 %v2349_v28  ;;  %v2373_v52 = vld [vmem:[#allocation1 + $0x12] sm:$0xff] }
 0x160   :  { %1129 = vmatpush.bf16.msra.mxu0 %v1599_v23  ;;  %1142 = vmatpush.bf16.msrb.mxu1 %v1695_v24  ;;  %v1539_v23 = vor.u32 %v1996_v14, %v1538_v47  ;;  %v1635_v24 = vor.u32 %v2020_v18, %v1634_v17 }
 0x161   :  { %1155 = vmatpush.bf16.msrb.mxu2 %v1791_v31  ;;  %1168 = vmatpush.bf16.msra.mxu3 %v1887_v32  ;;  %v1731_v31 = vor.u32 %v2044_v20, %v1730_v19  ;;  %v1827_v32 = vor.u32 %v2068_v22, %v1826_v21 }
 0x164   :  { %1130 = vmatpush.bf16.msra.mxu0 %v1587_v40  ;;  %1143 = vmatpush.bf16.msrb.mxu1 %v1683_v41  ;;  %v1527_v40 = vor.u32 %v1993_v30, %v1526_v29  ;;  %v1623_v41 = vor.u32 %v2017_v35, %v1622_v33 }
 0x165   :  { %1156 = vmatpush.bf16.msrb.mxu2 %v1779_v44  ;;  %1169 = vmatpush.bf16.msra.mxu3 %v1875_v45  ;;  %v1719_v44 = vor.u32 %v2041_v37, %v1718_v36  ;;  %v1815_v45 = vor.u32 %v2065_v39, %v1814_v38 }
 0x168   :  { %1131 = vmatpush.bf16.msra.mxu0 %v1575_v46  ;;  %1144 = vmatpush.bf16.msrb.mxu1 %v1671_v54  ;;  %v1515_v46 = vor.u32 %v1990_v43, %v1514_v42  ;;  %v1611_v54 = vor.u32 %v2014_v49, %v1610_v48  ;;  %v2107_v42 = vld [vmem:[#allocation7 + $0xb8] sm:$0xff]  ;;  %v2090_v43 = vld [vmem:[#allocation7 + $0x30] sm:$0xff]  ;;  %v2089_v49 = vld [vmem:[#allocation7 + $0x28] sm:$0xff] }
 0x169   :  { %1157 = vmatpush.bf16.msrb.mxu2 %v1767_v57  ;;  %1170 = vmatpush.bf16.msra.mxu3 %v1863_v58 }
 0x16c   :  { %1132 = vmatpush.bf16.msra.mxu0 %v1563_v1  ;;  %1145 = vmatpush.bf16.msrb.mxu1 %v1659_v2  ;;  %v508_v1 = vperm.slane %v236_v63, 1 }
 0x16d   :  { %1158 = vmatpush.bf16.msrb.mxu2 %v1755_v5  ;;  %1171 = vmatpush.bf16.msra.mxu3 %v1851_v6 }
 0x16e   :  { %1085 = vmatmul.bf16.vlgmr.msrb.gmra.mxu0 %v2343_v25  ;;  %1098 = vmatmul.bf16.vlgmr.msra.gmra.mxu1 %v2345_v26 }
 0x16f   :  { %1111 = vmatmul.bf16.vlgmr.msra.gmra.mxu2 %v2347_v27  ;;  %1124 = vmatmul.bf16.vlgmr.msrb.gmra.mxu3 %v2349_v28 }
 0x170   :  { %1133 = vmatpush.bf16.msra.mxu0 %v1551_v12  ;;  %1146 = vmatpush.bf16.msrb.mxu1 %v1647_v13 }
 0x171   :  { %1159 = vmatpush.bf16.msrb.mxu2 %v1743_v15  ;;  %1172 = vmatpush.bf16.msra.mxu3 %v1839_v16  ;;  %v509_v15 = vperm.slane %v236_v63, 2 }
 0x174   :  { %1134 = vmatpush.bf16.msra.mxu0 %v1539_v23  ;;  %1147 = vmatpush.bf16.msrb.mxu1 %v1635_v24 }
 0x175   :  { %1160 = vmatpush.bf16.msrb.mxu2 %v1731_v31  ;;  %1173 = vmatpush.bf16.msra.mxu3 %v1827_v32 }
 0x178   :  { %1135 = vmatpush.bf16.msra.mxu0 %v1527_v40  ;;  %1148 = vmatpush.bf16.msrb.mxu1 %v1623_v41  ;;  %v2091_v40 = vld [vmem:[#allocation7 + $0x38] sm:$0xff] }
 0x179   :  { %1161 = vmatpush.bf16.msrb.mxu2 %v1719_v44  ;;  %1174 = vmatpush.bf16.msra.mxu3 %v1815_v45  ;;  %v2099_v41 = vld [vmem:[#allocation7 + $0x78] sm:$0xff]  ;;  %v2098_v44 = vld [vmem:[#allocation7 + $0x70] sm:$0xff] }
 0x17a   :  { %v2106_v45 = vld [vmem:[#allocation7 + $0xb0] sm:$0xff] }
 0x17c   :  { %1136 = vmatpush.bf16.msra.mxu0 %v1515_v46  ;;  %1149 = vmatpush.bf16.msrb.mxu1 %v1611_v54  ;;  %v2096_v46 = vld [vmem:[#allocation7 + $0x60] sm:$0xff] }
 0x17d   :  { %1162 = vmatpush.bf16.msrb.mxu2 %v1707_v55  ;;  %1175 = vmatpush.bf16.msra.mxu3 %v1803_v56  ;;  %v2104_v54 = vld [vmem:[#allocation7 + $0xa0] sm:$0xff]  ;;  %v238_v56 = vld [vmem:[#allocation6] sm:$0x7] }
 0x17f   :  { %1137 = vmatmul.bf16.vlgmr.msra.gmra.mxu0 %v2343_v25  ;;  %1150 = vmatmul.bf16.vlgmr.msrb.gmra.mxu1 %v2345_v26 }
 0x180   :  { %1163 = vmatmul.bf16.vlgmr.msrb.gmra.mxu2 %v2347_v27  ;;  %1176 = vmatmul.bf16.vlgmr.msra.gmra.mxu3 %v2349_v28 }
 0x181   :  { %1436 = vmatpush.bf16.msrb.mxu0 %v2091_v40  ;;  %1449 = vmatpush.bf16.msra.mxu1 %v2099_v41 }
 0x182   :  { %1462 = vmatpush.bf16.msra.mxu2 %v2107_v42 }
 0x185   :  { %1437 = vmatpush.bf16.msrb.mxu0 %v2090_v43  ;;  %1450 = vmatpush.bf16.msra.mxu1 %v2098_v44 }
 0x186   :  { %1463 = vmatpush.bf16.msra.mxu2 %v2106_v45 }
 0x189   :  { %1438 = vmatpush.bf16.msrb.mxu0 %v2089_v49  ;;  %1451 = vmatpush.bf16.msra.mxu1 %v2097_v50 }
 0x18a   :  { %1464 = vmatpush.bf16.msra.mxu2 %v2105_v51 }
 0x18d   :  { %1439 = vmatpush.bf16.msrb.mxu0 %v2088_v53  ;;  %1452 = vmatpush.bf16.msra.mxu1 %v2096_v46 }
 0x18e   :  { %1465 = vmatpush.bf16.msra.mxu2 %v2104_v54 }
 0x1db   :  { %v1034_v57 = vpop.f32.mrf.mxu0  ;;  %v1047_v58 = vpop.f32.mrf.mxu1 }
 0x1dc   :  { %v1035_v3 = vadd.f32 %v1034_v57, %v507_v0  ;;  %v2375_v57 = vld [vmem:[#allocation1] sm:$0xff] }
 0x1de   :  { %v1048_v5 = vadd.f32 %v1047_v58, %v1035_v3  ;;  %v2377_v58 = vld [vmem:[#allocation1 + $0x9] sm:$0xff]  ;;  %v2102_v3 = vld [vmem:[#allocation7 + $0x90] sm:$0xff] }
 0x1df   :  { %1256 = vst [vmem:[#allocation1] ss:$9 sm:$0xff] %v238_v56 }
 0x1e2   :  { %v1060_v59 = vpop.f32.mrf.mxu2  ;;  %v1073_v60 = vpop.f32.mrf.mxu3 }
 0x1e3   :  { %v1036_v61 = vpop.f32.mrf.mxu0  ;;  %v1049_v62 = vpop.f32.mrf.mxu1  ;;  %v1061_v28 = vadd.f32 %v1060_v59, %v1048_v5 }
 0x1e4   :  { %v2095_v61 = vld [vmem:[#allocation7 + $0x58] sm:$0xff] }
 0x1e5   :  { %v1074_v11 = vadd.f32 %v1073_v60, %v1061_v28  ;;  %v2087_v60 = vld [vmem:[#allocation7 + $0x18] sm:$0xff]  ;;  %1453 = vmatpush.bf16.msra.mxu1 %v2095_v61  ;;  %v2101_v28 = vld [vmem:[#allocation7 + $0x88] sm:$0xff] }
 0x1e6   :  { %v2103_v62 = vld [vmem:[#allocation7 + $0x98] sm:$0xff]  ;;  %1440 = vmatpush.bf16.msrb.mxu0 %v2087_v60 }
 0x1e7   :  { %v1185_v36 = vmul.f32 %v1074_v11, %v1074_v11  ;;  %1466 = vmatpush.bf16.msra.mxu2 %v2103_v62 }
 0x1ea   :  { %v1062_v2 = vpop.f32.mrf.mxu2  ;;  %v1075_v25 = vpop.f32.mrf.mxu3 }
 0x1eb   :  { %v1086_v26 = vpop.f32.mrf.mxu0  ;;  %v1099_v4 = vpop.f32.mrf.mxu1  ;;  %v2094_v2 = vld [vmem:[#allocation7 + $0x50] sm:$0xff]  ;;  %1467 = vmatpush.bf16.msra.mxu2 %v2102_v3 }
 0x1ec   :  { %v1087_v27 = vadd.f32 %v1086_v26, %v508_v1  ;;  %v2086_v1 = vld [vmem:[#allocation7 + $0x10] sm:$0xff]  ;;  %1454 = vmatpush.bf16.msra.mxu1 %v2094_v2 }
 0x1ed   :  { %1441 = vmatpush.bf16.msrb.mxu0 %v2086_v1 }
 0x1ee   :  { %v1100_v6 = vadd.f32 %v1099_v4, %v1087_v27  ;;  %v2085_v4 = vld [vmem:[#allocation7 + $0x8] sm:$0xff] }
 0x1ef   :  { %v2093_v27 = vld [vmem:[#allocation7 + $0x48] sm:$0xff]  ;;  %1468 = vmatpush.bf16.msra.mxu2 %v2101_v28 }
 0x1f0   :  { %1455 = vmatpush.bf16.msra.mxu1 %v2093_v27 }
 0x1f1   :  { %1442 = vmatpush.bf16.msrb.mxu0 %v2085_v4 }
 0x1f2   :  { %v1112_v7 = vpop.f32.mrf.mxu2  ;;  %v1125_v8 = vpop.f32.mrf.mxu3 }
 0x1f3   :  { %v1113_v34 = vadd.f32 %v1112_v7, %v1100_v6  ;;  %v1088_v9 = vpop.f32.mrf.mxu0  ;;  %v1101_v10 = vpop.f32.mrf.mxu1  ;;  %v2084_v6 = vld [vmem:[#allocation7] sm:$0xff] }
 0x1f4   :  { %v2092_v7 = vld [vmem:[#allocation7 + $0x40] sm:$0xff] }
 0x1f5   :  { %v1126_v12 = vadd.f32 %v1125_v8, %v1113_v34  ;;  %v2100_v8 = vld [vmem:[#allocation7 + $0x80] sm:$0xff]  ;;  %1443 = vmatpush.bf16.msrb.mxu0 %v2084_v6  ;;  %1456 = vmatpush.bf16.msra.mxu1 %v2092_v7 }
 0x1f6   :  { %1469 = vmatpush.bf16.msra.mxu2 %v2100_v8 }
 0x1f7   :  { %v2366_v13 = vpack.c.bf16 %v1126_v12, %v1074_v11  ;;  %v1181_v30 = vadd.f32 %v1126_v12, %v1074_v11  ;;  %v1186_v32 = vmul.f32 %v1126_v12, %v1126_v12 }
 0x1f9   :  { %v1188_v38 = vadd.f32 %v1186_v32, %v1185_v36 }
 0x1fa   :  { %v1114_v47 = vpop.f32.mrf.mxu2  ;;  %v1127_v14 = vpop.f32.mrf.mxu3 }
 0x1fb   :  { %v1211_v14 = vunpack.c.l.bf16 %v2366_v13 }
 0x1fc   :  { %v1138_v16 = vpop.f32.mrf.mxu0  ;;  %v1151_v17 = vpop.f32.mrf.mxu1 }
 0x1fd   :  { %v1139_v18 = vadd.f32 %v1138_v16, %v509_v15  ;;  %v1212_v15 = vunpack.c.h.bf16 %v2366_v13 }
 0x1ff   :  { %v1152_v19 = vadd.f32 %v1151_v17, %v1139_v18 }
 0x203   :  { %v1164_v20 = vpop.f32.mrf.mxu2  ;;  %v1177_v21 = vpop.f32.mrf.mxu3 }
 0x204   :  { %v1165_v22 = vadd.f32 %v1164_v20, %v1152_v19  ;;  %v1140_v23 = vpop.f32.mrf.mxu0  ;;  %v1153_v24 = vpop.f32.mrf.mxu1 }
 0x205   :  { %v1238_v24 = vpack.i.b16 %v2377_v58, %v2377_v58 }
 0x206   :  { %v2368_v29 = vadd.f32 %v1177_v21, %v1165_v22  ;;  %v1235_v22 = vpack.i.b16 %v2375_v57, %v2375_v57 }
 0x208   :  { %v1182_v31 = vadd.f32 %v1181_v30, %v2368_v29  ;;  %v1187_v37 = vmul.f32 %v2368_v29, %v2368_v29  ;;  %v1209_v10 = vpack.c.bf16 %v2368_v29, %v2368_v29  ;;  %v1241_v29 = vpack.i.b16 %v2373_v52, %v2373_v52 }
 0x209   :  { %v1237_v36 = vperm.slane %v1235_v22, 0 }
 0x20a   :  { %1183 = vadd.xlane.f32.xlu1 %v1182_v31  ;;  %v1189_v39 = vadd.f32 %v1188_v38, %v1187_v37  ;;  %v1213_v16 = vunpack.c.l.bf16 %v1209_v10  ;;  %v1240_v37 = vperm.slane %v1238_v24, 0  ;;  %v1243_v38 = vperm.slane %v1241_v29, 0 }
 0x20b   :  { %v1166_v33 = vpop.f32.mrf.mxu2  ;;  %v1179_v35 = vpop.f32.mrf.mxu3  ;;  %v1247_v52 = vunpack.c.l.bf16 %v1237_v36 }
 0x20c   :  { %v1257_v33 = vld [vmem:[#allocation1] sm:$0xff]  ;;  %v1258_v35 = vld [vmem:[#allocation1 + $0x9] sm:$0xff]  ;;  %v1248_v46 = vunpack.c.l.bf16 %v1240_v37 }
 0x20d   :  { %v1260_v44 = vpack.i.b16 %v1257_v33, %v1257_v33  ;;  %v1263_v45 = vpack.i.b16 %v1258_v35, %v1258_v35 }
 0x20f   :  { %v1262_v56 = vperm.slane %v1260_v44, 0  ;;  %v1265_v57 = vperm.slane %v1263_v45, 0 }
 0x211   :  { %v1272_v1 = vunpack.c.l.bf16 %v1262_v56 }
 0x212   :  { %1190 = vadd.xlane.f32.xlu1 %v1189_v39  ;;  %v1259_v39 = vld [vmem:[#allocation1 + $0x12] sm:$0xff] }
 0x213   :  { %v1266_v51 = vpack.i.b16 %v1259_v39, %v1259_v39 }
 0x215   :  { %v1268_v61 = vperm.slane %v1266_v51, 0 }
 0x27d   :  { %v1184_v48 = vpop.xlane.xlu1 %1183 }
 0x27e   :  { %v1192_v55 = vmul.f32 0.0033333334, %v1184_v48 }
 0x280   :  { %v1194_v63 = vmul.f32 %v1192_v55, %v1192_v55  ;;  %v1210_v34 = vpack.c.bf16 %v1192_v55, %v1192_v55  ;;  %v1249_v55 = vunpack.c.l.bf16 %v1243_v38 }
 0x282   :  { %v1214_v12 = vunpack.c.l.bf16 %v1210_v34 }
 0x284   :  { %v1215_v18 = vsub.f32 %v1211_v14, %v1214_v12  ;;  %v1216_v19 = vsub.f32 %v1212_v15, %v1214_v12  ;;  %v1217_v20 = vsub.f32 %v1213_v16, %v1214_v12 }
 0x285   :  { %v1191_v59 = vpop.xlane.xlu1 %1190 }
 0x286   :  { %v1193_v0 = vmul.f32 0.0033333334, %v1191_v59  ;;  %v1218_v30 = vpack.c.bf16 %v1216_v19, %v1215_v18  ;;  %v1219_v13 = vpack.c.bf16 %v1217_v20, %v1217_v20 }
 0x288   :  { %v1195_v25 = vsub.f32 %v1193_v0, %v1194_v63  ;;  %v1221_v40 = vunpack.c.l.bf16 %v1218_v30  ;;  %v1222_v41 = vunpack.c.h.bf16 %v1218_v30  ;;  %v1223_v42 = vunpack.c.l.bf16 %v1219_v13 }
 0x28a   :  { %v1196_v26 = vmax.f32 %v1195_v25, 0.0  ;;  %v1273_v25 = vunpack.c.l.bf16 %v1265_v57 }
 0x28c   :  { %v1197_v5 = vadd.f32 1e-05, %v1196_v26  ;;  %v1274_v26 = vunpack.c.l.bf16 %v1268_v61 }
 0x28e   :  { %2121 = vrsqrt.f32 %v1197_v5  ;;  %vm1204_vm5 = vweird.f32 %v1197_v5 }
 0x294   :  { %v2122_v9 = vpop.eup %2121 }
 0x295   :  { %v1199_v11 = vmul.f32 %v2122_v9, %v1197_v5  ;;  %vm1205_vm4 = vweird.f32 %v2122_v9 }
 0x296   :  { %vm1206_vm6 = vmor %vm1204_vm5, %vm1205_vm4 }
 0x297   :  { %v1200_v47 = vmul.f32 %v2122_v9, %v1199_v11 }
 0x299   :  { %v1201_v17 = vmul.f32 0.5, %v1200_v47  ;;  %v2118_v47 = vld [vmem:[%s2405_s10] ss:$0 sm:$0xff] }
 0x29b   :  { %v1202_v21 = vsub.f32 1.5, %v1201_v17 }
 0x29d   :  { %v1203_v23 = vmul.f32 %v2122_v9, %v1202_v21 }
 0x29f   :  { %v1207_v31 = vsel %vm1206_vm6, %v2122_v9, %v1203_v23 }
 0x2a0   :  { %v1220_v32 = vpack.c.bf16 %v1207_v31, %v1207_v31 }
 0x2a2   :  { %v1224_v43 = vunpack.c.l.bf16 %v1220_v32 }
 0x2a4   :  { %v1225_v48 = vmul.f32 %v1224_v43, %v1221_v40  ;;  %v1226_v49 = vmul.f32 %v1224_v43, %v1222_v41  ;;  %v1227_v50 = vmul.f32 %v1224_v43, %v1223_v42 }
 0x2a6   :  { %v1228_v53 = vpack.c.bf16 %v1226_v49, %v1225_v48  ;;  %v1229_v54 = vpack.c.bf16 %v1227_v50, %v1227_v50 }
 0x2a8   :  { %v1244_v58 = vunpack.c.l.bf16 %v1228_v53  ;;  %v1245_v59 = vunpack.c.h.bf16 %v1228_v53  ;;  %v1246_v60 = vunpack.c.l.bf16 %v1229_v54 }
 0x2aa   :  { %v1250_v62 = vmul.f32 %v1247_v52, %v1244_v58  ;;  %v1251_v63 = vmul.f32 %v1248_v46, %v1245_v59  ;;  %v1252_v0 = vmul.f32 %v1249_v55, %v1246_v60 }
 0x2ac   :  { %v1253_v2 = vpack.c.bf16 %v1251_v63, %v1250_v62  ;;  %v1254_v3 = vpack.c.bf16 %v1252_v0, %v1252_v0 }
 0x2ae   :  { %v1269_v4 = vunpack.c.l.bf16 %v1253_v2  ;;  %v1270_v27 = vunpack.c.h.bf16 %v1253_v2  ;;  %v1271_v5 = vunpack.c.l.bf16 %v1254_v3 }
 0x2b0   :  { %v1275_v28 = vadd.f32 %v1272_v1, %v1269_v4  ;;  %v1276_v6 = vadd.f32 %v1273_v25, %v1270_v27  ;;  %v1277_v7 = vadd.f32 %v1274_v26, %v1271_v5 }
 0x2b2   :  { %v1283_v8 = vmax.f32 %v1275_v28, 0.0  ;;  %v1284_v34 = vmax.f32 %v1276_v6, 0.0  ;;  %v1285_v9 = vmax.f32 %v1277_v7, 0.0 }
 0x2b4   :  { %v1286_v10 = vpack.c.bf16 %v1283_v8, %v1283_v8  ;;  %v1287_v11 = vpack.c.bf16 %v1284_v34, %v1284_v34  ;;  %v1288_v12 = vpack.c.bf16 %v1285_v9, %v1285_v9 }
 0x2b6   :  { %1444 = vmatmul.bf16.vlgmr.msrb.gmra.mxu0 %v1286_v10  ;;  %1457 = vmatmul.bf16.vlgmr.msra.gmra.mxu1 %v1287_v11 }
 0x2b7   :  { %1470 = vmatmul.bf16.vlgmr.msra.gmra.mxu2 %v1288_v12 }
 0x333   :  { %v1445_v14 = vpop.f32.mrf.mxu0  ;;  %v1458_v15 = vpop.f32.mrf.mxu1 }
 0x334   :  { %v1446_v16 = vadd.f32 %v2118_v47, %v1445_v14 }
 0x336   :  { %v1459_v17 = vadd.f32 %v1458_v15, %v1446_v16 }
 0x33a   :  { %v1471_v18 = vpop.f32.mrf.mxu2 }
 0x33b   :  { %v1472_v19 = vadd.f32 %v1471_v18, %v1459_v17  ;;  %v1447_v20 = vpop.f32.mrf.mxu0  ;;  %v1460_v21 = vpop.f32.mrf.mxu1 }
 0x33d   :  { %2123 = vtanh.f32 %v1472_v19 }
 0x342   :  { %v1473_v22 = vpop.f32.mrf.mxu2 }
 0x343   :  { %v2124_v23 = vpop.eup %2123 }
 0x344   :  { %1476 = vst [vmem:[%s2406_s11] sm:$0xff] %v2124_v23 }
 0x345   :  { %1481 = vsyncpa [#allocation3], 1 }
 0x346   :  { %1482 = vsyncpa [#allocation5], 1 }
 0x347   :  { %1483 = vsyncpa [#allocation8], 1 }

</bundles_post_ra>
